<compile_context>
chip_gen: v6e
topology: v6e:2x2x1
jax: 0.10.0
libtpu: 0.0.40
codegen_flags: <defaults>
</compile_context>

<pallas_src>
import math

import jax
import jax.numpy as jnp
from jax.experimental import pallas as pl
from jax.experimental.pallas import tpu as pltpu


def _ew_kernel_bias(x_ref, w_ref, b_ref, o_ref, acc_ref):
    # x_ref: (TB, TC, TF), w_ref: (TC, TF), b_ref: (1, TC) f32,
    # o_ref: (TB, TC), acc_ref: (TB, TC, 128) f32.
    k = pl.program_id(2)

    @pl.when(k == 0)
    def _():
        acc_ref[...] = jnp.zeros_like(acc_ref)

    n_groups = x_ref.shape[-1] // 128
    acc = acc_ref[...]
    for g in range(n_groups):  # static unroll; pure VPU mul+add per 128-lane group
        lo, hi = g * 128, (g + 1) * 128
        xg = x_ref[:, :, lo:hi].astype(jnp.float32)   # cast BEFORE multiply (f32 acc)
        wg = w_ref[:, lo:hi].astype(jnp.float32)
        acc = acc + xg * wg[None, :, :]
    acc_ref[...] = acc

    @pl.when(k == pl.num_programs(2) - 1)
    def _():
        red = jnp.sum(acc_ref[...], axis=-1)          # single XLU lane reduce
        o_ref[...] = (red + b_ref[...]).astype(o_ref.dtype)  # (1,TC) broadcasts over TB


def _ew_kernel_nobias(x_ref, w_ref, o_ref, acc_ref):
    k = pl.program_id(2)

    @pl.when(k == 0)
    def _():
        acc_ref[...] = jnp.zeros_like(acc_ref)

    n_groups = x_ref.shape[-1] // 128
    acc = acc_ref[...]
    for g in range(n_groups):
        lo, hi = g * 128, (g + 1) * 128
        xg = x_ref[:, :, lo:hi].astype(jnp.float32)
        wg = w_ref[:, lo:hi].astype(jnp.float32)
        acc = acc + xg * wg[None, :, :]
    acc_ref[...] = acc

    @pl.when(k == pl.num_programs(2) - 1)
    def _():
        o_ref[...] = jnp.sum(acc_ref[...], axis=-1).astype(o_ref.dtype)


def _round_up(n, m):
    return ((n + m - 1) // m) * m


def _pick_tile(dim, pref, align):
    """Largest multiple of `align` that is <= min(pref, dim) and divides `dim`.
    `dim` is guaranteed (by wrapper padding) to be a multiple of `align`."""
    t = min(pref, dim)
    t = max(align, (t // align) * align)
    while dim % t != 0:
        t -= align
    return t


def element_wise_layer(x, weight, bias=None):
    """x: (..., C, F), weight: (C, F), bias: (C,) or None -> (..., C)."""
    *lead, C, F = x.shape
    assert weight.shape == (C, F)
    out_dtype = jnp.promote_types(x.dtype, weight.dtype)

    B = math.prod(lead) if lead else 1
    xb = x.reshape(B, C, F)

    # Pad to hardware-friendly extents: sublane(8) for B, lane(128) for C and F.
    # Zero padding contributes 0 to the reduction; padded C rows are sliced off.
    Bp, Cp, Fp = _round_up(B, 8), _round_up(C, 128), _round_up(F, 128)
    w = weight
    if (Bp, Cp, Fp) != (B, C, F):
        xb = jnp.pad(xb, ((0, Bp - B), (0, Cp - C), (0, Fp - F)))
        w = jnp.pad(w, ((0, Cp - C), (0, Fp - F)))

    # Tile choices: TB=32 (amortizes step overhead & weight re-fetch), lane-dense TC/TF.
    TB = _pick_tile(Bp, 32, 8)
    TC = _pick_tile(Cp, 128, 128)
    TF = _pick_tile(Fp, 512, 128)
    grid = (Bp // TB, Cp // TC, Fp // TF)

    x_spec = pl.BlockSpec((TB, TC, TF), lambda b, c, k: (b, c, k))
    w_spec = pl.BlockSpec((TC, TF), lambda b, c, k: (c, k))
    out_spec = pl.BlockSpec((TB, TC), lambda b, c, k: (b, c))  # resident across k

    scratch = [pltpu.VMEM((TB, TC, 128), jnp.float32)]
    cparams = pltpu.CompilerParams(
        dimension_semantics=("parallel", "parallel", "arbitrary"),
        vmem_limit_bytes=48 << 20,
    )
    itemsize = jnp.dtype(x.dtype).itemsize
    cost = pl.CostEstimate(
        flops=2 * Bp * Cp * Fp,
        transcendentals=0,
        bytes_accessed=itemsize * (Bp * Cp * Fp + (Bp // TB) * Cp * Fp + Bp * Cp),
    )
    out_shape = jax.ShapeDtypeStruct((Bp, Cp), out_dtype)

    if bias is not None:
        # Carry bias as f32 all the way to the in-kernel add; never down-cast it.
        b2 = jnp.pad(bias.astype(jnp.float32), (0, Cp - C)).reshape(1, Cp)
        b_spec = pl.BlockSpec((1, TC), lambda b, c, k: (0, c))
        out = pl.pallas_call(
            _ew_kernel_bias,
            out_shape=out_shape,
            grid_spec=pltpu.PrefetchScalarGridSpec(
                num_scalar_prefetch=0,
                grid=grid,
                in_specs=[x_spec, w_spec, b_spec],
                out_specs=out_spec,
                scratch_shapes=scratch,
            ),
            compiler_params=cparams,
            cost_estimate=cost,
        )(xb, w, b2)
    else:
        out = pl.pallas_call(
            _ew_kernel_nobias,
            out_shape=out_shape,
            grid_spec=pltpu.PrefetchScalarGridSpec(
                num_scalar_prefetch=0,
                grid=grid,
                in_specs=[x_spec, w_spec],
                out_specs=out_spec,
                scratch_shapes=scratch,
            ),
            compiler_params=cparams,
            cost_estimate=cost,
        )(xb, w)

    out = out[:B, :C]
    return out.reshape(*lead, C) if lead else out.reshape(C)


if __name__ == "__main__":
    # Small shapes consistent with the module: in_features = number of labels,
    # out_features = per-label feature dim.
    batch = 2
    in_features = 8
    out_features = 32

    key = jax.random.PRNGKey(0)
    k_x, k_w, k_b = jax.random.split(key, 3)

    # Deterministic parameter init matching reset_parameters():
    # uniform(-stdv, stdv), stdv = 1 / sqrt(out_features)
    stdv = 1.0 / math.sqrt(out_features)
    weight = jax.random.uniform(
        k_w, (in_features, out_features), minval=-stdv, maxval=stdv, dtype=jnp.float32
    )
    bias = jax.random.uniform(
        k_b, (in_features,), minval=-stdv, maxval=stdv, dtype=jnp.float32
    )
    x = jax.random.normal(k_x, (batch, in_features, out_features), dtype=jnp.float32)

    # With-bias path.
    out = element_wise_layer(x, weight, bias)
    out = jax.block_until_ready(out)
    ref = jnp.sum(x * weight[None, :, :], axis=-1) + bias[None, :]
    assert out.shape == (batch, in_features)
    assert jnp.allclose(out, ref, atol=1e-5, rtol=1e-5)

    # bias=False path (no zero-add, no extra VMEM input).
    out_nb = element_wise_layer(x, weight, None)
    out_nb = jax.block_until_ready(out_nb)
    ref_nb = jnp.sum(x * weight[None, :, :], axis=-1)
    assert jnp.allclose(out_nb, ref_nb, atol=1e-5, rtol=1e-5)

    print("KERNEL_OK")
</pallas_src>

<mosaic_0001>
module attributes {stable_mosaic.version = 11 : i64} {
  func.func @_ew_kernel_bias(%arg0: i32, %arg1: i32, %arg2: i32, %arg3: memref<8x128x128xf32, #tpu.memory_space<vmem>>, %arg4: memref<128x128xf32, #tpu.memory_space<vmem>>, %arg5: memref<1x128xf32, #tpu.memory_space<vmem>>, %arg6: memref<8x128xf32, #tpu.memory_space<vmem>>, %arg7: memref<8x128x128xf32, #tpu.memory_space<vmem>>) attributes {dimension_semantics = [#tpu.dimension_semantics<parallel>, #tpu.dimension_semantics<parallel>, #tpu.dimension_semantics<arbitrary>], iteration_bounds = array<i64: 1, 1, 1>, scalar_prefetch = 0 : i64, scratch_operands = 1 : i64, tpu.core_type = #tpu.core_type<tc>, window_params = [{transform_indices = @transform_0, window_bounds = array<i64: 8, 128, 128>}, {transform_indices = @transform_1, window_bounds = array<i64: 128, 128>}, {transform_indices = @transform_2, window_bounds = array<i64: 1, 128>}, {transform_indices = @transform_3, window_bounds = array<i64: 8, 128>}]} {
    %c0_i32 = arith.constant 0 : i32
    %0 = arith.cmpi eq, %arg2, %c0_i32 : i32
    %1 = arith.extui %0 : i1 to i32
    %c0_i32_0 = arith.constant 0 : i32
    %2 = arith.cmpi ne, %1, %c0_i32_0 : i32
    scf.if %2 {
      %cst = arith.constant 0.000000e+00 : f32
      %14 = vector.broadcast %cst : f32 to vector<8x128x128xf32>
      %c0_13 = arith.constant 0 : index
      %c0_14 = arith.constant 0 : index
      %c0_15 = arith.constant 0 : index
      %15 = vector.load %arg7[%c0_13, %c0_14, %c0_15] : memref<8x128x128xf32, #tpu.memory_space<vmem>>, vector<8x128x128xf32>
      tpu.vector_store %arg7[%c0_13, %c0_14, %c0_15], %14 {strides = array<i32>} : memref<8x128x128xf32, #tpu.memory_space<vmem>>, vector<8x128x128xf32>,
    } else {
    }
    %c0 = arith.constant 0 : index
    %c0_1 = arith.constant 0 : index
    %c0_2 = arith.constant 0 : index
    %3 = vector.load %arg7[%c0, %c0_1, %c0_2] : memref<8x128x128xf32, #tpu.memory_space<vmem>>, vector<8x128x128xf32>
    %c0_3 = arith.constant 0 : index
    %c0_4 = arith.constant 0 : index
    %c0_5 = arith.constant 0 : index
    %4 = vector.load %arg3[%c0_3, %c0_4, %c0_5] : memref<8x128x128xf32, #tpu.memory_space<vmem>>, vector<8x128x128xf32>
    %c0_6 = arith.constant 0 : index
    %c0_7 = arith.constant 0 : index
    %5 = vector.load %arg4[%c0_6, %c0_7] : memref<128x128xf32, #tpu.memory_space<vmem>>, vector<128x128xf32>
    %6 = vector.shape_cast %5 : vector<128x128xf32> to vector<1x128x128xf32>
    %7 = vector.broadcast %6 : vector<1x128x128xf32> to vector<8x128x128xf32>
    %8 = arith.mulf %4, %7 : vector<8x128x128xf32>
    %9 = arith.addf %3, %8 : vector<8x128x128xf32>
    %c0_8 = arith.constant 0 : index
    %c0_9 = arith.constant 0 : index
    %c0_10 = arith.constant 0 : index
    %10 = vector.load %arg7[%c0_8, %c0_9, %c0_10] : memref<8x128x128xf32, #tpu.memory_space<vmem>>, vector<8x128x128xf32>
    tpu.vector_store %arg7[%c0_8, %c0_9, %c0_10], %9 {strides = array<i32>} : memref<8x128x128xf32, #tpu.memory_space<vmem>>, vector<8x128x128xf32>,
    %c0_i32_11 = arith.constant 0 : i32
    %11 = arith.cmpi eq, %arg2, %c0_i32_11 : i32
    %12 = arith.extui %11 : i1 to i32
    %c0_i32_12 = arith.constant 0 : i32
    %13 = arith.cmpi ne, %12, %c0_i32_12 : i32
    scf.if %13 {
      %c0_13 = arith.constant 0 : index
      %c0_14 = arith.constant 0 : index
      %c0_15 = arith.constant 0 : index
      %14 = vector.load %arg7[%c0_13, %c0_14, %c0_15] : memref<8x128x128xf32, #tpu.memory_space<vmem>>, vector<8x128x128xf32>
      %cst = arith.constant dense<0.000000e+00> : vector<8x128xf32>
      %15 = vector.multi_reduction <add>, %14, %cst [2] : vector<8x128x128xf32> to vector<8x128xf32>
      %c0_16 = arith.constant 0 : index
      %c0_17 = arith.constant 0 : index
      %16 = vector.load %arg5[%c0_16, %c0_17] : memref<1x128xf32, #tpu.memory_space<vmem>>, vector<1x128xf32>
      %17 = vector.broadcast %16 : vector<1x128xf32> to vector<8x128xf32>
      %18 = arith.addf %15, %17 : vector<8x128xf32>
      %c0_18 = arith.constant 0 : index
      %c0_19 = arith.constant 0 : index
      %19 = vector.load %arg6[%c0_18, %c0_19] : memref<8x128xf32, #tpu.memory_space<vmem>>, vector<8x128xf32>
      tpu.vector_store %arg6[%c0_18, %c0_19], %18 {strides = array<i32>} : memref<8x128xf32, #tpu.memory_space<vmem>>, vector<8x128xf32>,
    } else {
    }
    return
  }
  func.func @transform_0(%arg0: i32, %arg1: i32, %arg2: i32) -> (i32, i32, i32) {
    %c0_i32 = arith.constant 0 : i32
    return %arg0, %arg1, %arg2 : i32, i32, i32
  }
  func.func @transform_1(%arg0: i32, %arg1: i32, %arg2: i32) -> (i32, i32) {
    %c0_i32 = arith.constant 0 : i32
    return %arg1, %arg2 : i32, i32
  }
  func.func @transform_2(%arg0: i32, %arg1: i32, %arg2: i32) -> (i32, i32) {
    %c0_i32 = arith.constant 0 : i32
    %c0_i32_0 = arith.constant 0 : i32
    return %c0_i32, %arg1 : i32, i32
  }
  func.func @transform_3(%arg0: i32, %arg1: i32, %arg2: i32) -> (i32, i32) {
    %c0_i32 = arith.constant 0 : i32
    return %arg0, %arg1 : i32, i32
  }
}

</mosaic_0001>

<bundles_post_ra>
// kernel: tpu_custom_call.1
= control target key start
LH: loop header
LB: loop body
LE: loop exit
PB: predicated region body
PF: predicated region fallthrough
CT: control target
= control target key end

     0   :  { %8 = vsyncpa [#allocation4], 0  ;;  %s3835_s0 = inlined_call_operand.hbm [shape: f32[8,128,128], index: 0, kind: input, shape index: {}]   ;;  %s3836_s1 = inlined_call_operand.hbm [shape: f32[128,128], index: 1, kind: input, shape index: {}]   ;;  %s3837_s2 = inlined_call_operand.vmem [shape: f32[1,128], index: 2, kind: input, shape index: {}]   ;;  %s3838_s3 = inlined_call_operand.hbm [shape: f32[8,128], index: 3, kind: output, shape index: {}]  }
   0x1   :  { %9 = vsyncpa [#allocation7], 0 }
   0x2   :  { %10 = vsyncpa [#allocation5], 0  ;;  %s2714_s12 = smov [#allocation3]  }
   0x3   :  { %s16_s13 = sshll.u32 %s2714_s12, 4  ;;  %s17_s13 = int_to_ptr.vmem [resolvable:$true] %s16_s13 }
   0x4   :  { %s2656_s14 = scalar_lea.vmem %s17_s13, 16384  ;;  %p2661_p1 = scmp.lt.s32.totalorder %s17_s13, %s17_s13 }
   0x5   :  { %p2657_p0 = scmp.ne.s32.totalorder %s17_s13, %s2656_s14  ;;  %p2662_p2 = scmp.lt.s32.totalorder %s2656_s14, %s2656_s14 }
   0x7   :  { %p2663_p3 = por %p2662_p2, %p2661_p1 }
   0x9   :  { %p2664_p4 = pnand %p2663_p3, %p2657_p0 }
   0xb   :  { %2667 = shalt.err (!%p2664_p4)
}
   0xc   :  { %s2715_s15 = smov 128   ;;  %s2716_s16 = smov 8  }
   0xd   :  { %22 = dma.hbm_to_vmem [thread:$0]  %s3835_s0, 16384, %s17_s13, [#allocation4], %s2715_s15, %s2715_s15, %s2716_s16  }
   0xe   :  { %s2717_s19 = smov [#allocation6]  }
   0xf   :  { %s28_s20 = sshll.u32 %s2717_s19, 4  ;;  %s29_s20 = int_to_ptr.vmem [resolvable:$true] %s28_s20 }
  0x10   :  { %s2676_s21 = scalar_lea.vmem %s29_s20, 2048  ;;  %p2681_p6 = scmp.lt.s32.totalorder %s29_s20, %s29_s20 }
  0x11   :  { %p2677_p5 = scmp.ne.s32.totalorder %s29_s20, %s2676_s21  ;;  %p2682_p7 = scmp.lt.s32.totalorder %s2676_s21, %s2676_s21 }
  0x13   :  { %p2683_p8 = por %p2682_p7, %p2681_p6 }
  0x15   :  { %p2684_p9 = pnand %p2683_p8, %p2677_p5 }
  0x17   :  { %2687 = shalt.err (!%p2684_p9)
}
  0x18   :  { %34 = dma.hbm_to_vmem [thread:$0]  %s3836_s1, 2048, %s29_s20, [#allocation7], %s2715_s15, %s2715_s15, %s2716_s16  }
  0x19   :  { %2708 = dma.done.wait [#allocation4], 16384  }
  0x1a   :  { %2709 = vsyncadd [#allocation4], 4294950912 }
  0x1b   :  { %2710 = dma.done.wait [#allocation7], 2048  }
  0x1c   :  { %2711 = vsyncadd [#allocation7], 4294965248  ;;  %v305_v0 = vld [vmem:[#allocation3 + $0x10] sm:$0xff]  ;;  %v303_v2 = vld [vmem:[#allocation3] sm:$0xff]  ;;  %vm1954_vm0 = vcmask 130112   ;;  %vm1961_vm1 = vcmask 195712  }
  0x1d   :  { %v2746_v1 = vld [vmem:[#allocation6 + $0x10] sm:$0xff]  ;;  %v2749_v4 = vld [vmem:[#allocation6] sm:$0xff]  ;;  %v306_v5 = vld [vmem:[#allocation3 + $0x18] sm:$0xff]  ;;  %vm1968_vm2 = vcmask 261312   ;;  %vm1975_vm3 = vcmask 326912   ;;  %vm1982_vm4 = vcmask 392512  }
  0x1e   :  { %v449_v3 = vmul.f32 %v2746_v1, %v305_v0  ;;  %v2751_v6 = vld [vmem:[#allocation6 + $0x18] sm:$0xff]  ;;  %v447_v7 = vmul.f32 %v2749_v4, %v303_v2  ;;  %v304_v8 = vld [vmem:[#allocation3 + $0x8] sm:$0xff]  ;;  %v307_v14 = vld [vmem:[#allocation3 + $0x20] sm:$0xff]  ;;  %vm1989_vm5 = vcmask 458112   ;;  %vm1996_vm6 = vcmask 523712  }
  0x1f   :  { %v2754_v9 = vld [vmem:[#allocation6 + $0x8] sm:$0xff]  ;;  %v450_v10 = vmul.f32 %v2751_v6, %v306_v5  ;;  %v2760_v15 = vld [vmem:[#allocation6 + $0x20] sm:$0xff]  ;;  %v310_v18 = vld [vmem:[#allocation3 + $0x38] sm:$0xff]  ;;  %vm2003_vm7 = vcmask 589312   ;;  %vm2010_vm8 = vcmask 654912   ;;  %vm2017_vm9 = vcmask 720512  }
  0x20   :  { %966 = vadd.xlane.f32.xlu1 %v449_v3  ;;  %962 = vadd.xlane.f32.xlu0 %v447_v7  ;;  %v448_v11 = vmul.f32 %v2754_v9, %v304_v8  ;;  %v308_v12 = vld [vmem:[#allocation3 + $0x28] sm:$0xff]  ;;  %v451_v17 = vmul.f32 %v2760_v15, %v307_v14  ;;  %v2764_v19 = vld [vmem:[#allocation6 + $0x38] sm:$0xff]  ;;  %v309_v20 = vld [vmem:[#allocation3 + $0x30] sm:$0xff]  ;;  %vm2024_vm10 = vcmask 786112   ;;  %vm3841_vm11 = vcmask 851712  }
  0x21   :  { %v2758_v13 = vld [vmem:[#allocation6 + $0x28] sm:$0xff]  ;;  %v2766_v21 = vld [vmem:[#allocation6 + $0x30] sm:$0xff]  ;;  %v454_v22 = vmul.f32 %v2764_v19, %v310_v18  ;;  %v311_v26 = vld [vmem:[#allocation3 + $0x40] sm:$0xff]  ;;  %vm2038_vm12 = vcmask 917312   ;;  %vm2045_vm13 = vcmask 982912   ;;  %vm2052_vm14 = vcmask 1048512  }
  0x22   :  { %v452_v16 = vmul.f32 %v2758_v13, %v308_v12  ;;  %v453_v23 = vmul.f32 %v2766_v21, %v309_v20  ;;  %v312_v24 = vld [vmem:[#allocation3 + $0x48] sm:$0xff]  ;;  %v2772_v27 = vld [vmem:[#allocation6 + $0x40] sm:$0xff]  ;;  %v314_v30 = vld [vmem:[#allocation3 + $0x58] sm:$0xff]  ;;  %vm2607_vm15 = vcmask 1041409  }
  0x23   :  { %v2770_v25 = vld [vmem:[#allocation6 + $0x48] sm:$0xff]  ;;  %v455_v29 = vmul.f32 %v2772_v27, %v311_v26  ;;  %v2776_v31 = vld [vmem:[#allocation6 + $0x58] sm:$0xff]  ;;  %v313_v32 = vld [vmem:[#allocation3 + $0x50] sm:$0xff] }
  0x24   :  { %968 = vadd.xlane.f32.xlu1 %v450_v10  ;;  %964 = vadd.xlane.f32.xlu0 %v448_v11  ;;  %v456_v28 = vmul.f32 %v2770_v25, %v312_v24  ;;  %v2778_v33 = vld [vmem:[#allocation6 + $0x50] sm:$0xff]  ;;  %v458_v34 = vmul.f32 %v2776_v31, %v314_v30  ;;  %v316_v36 = vld [vmem:[#allocation3 + $0x68] sm:$0xff]  ;;  %v315_v38 = vld [vmem:[#allocation3 + $0x60] sm:$0xff] }
  0x25   :  { %v457_v35 = vmul.f32 %v2778_v33, %v313_v32  ;;  %v2782_v37 = vld [vmem:[#allocation6 + $0x68] sm:$0xff]  ;;  %v2784_v39 = vld [vmem:[#allocation6 + $0x60] sm:$0xff]  ;;  %v318_v42 = vld [vmem:[#allocation3 + $0x78] sm:$0xff] }
  0x26   :  { %v460_v40 = vmul.f32 %v2782_v37, %v316_v36  ;;  %v459_v41 = vmul.f32 %v2784_v39, %v315_v38  ;;  %v2788_v43 = vld [vmem:[#allocation6 + $0x78] sm:$0xff]  ;;  %v317_v44 = vld [vmem:[#allocation3 + $0x70] sm:$0xff]  ;;  %v320_v48 = vld [vmem:[#allocation3 + $0x88] sm:$0xff] }
  0x27   :  { %v2790_v45 = vld [vmem:[#allocation6 + $0x70] sm:$0xff]  ;;  %v462_v46 = vmul.f32 %v2788_v43, %v318_v42  ;;  %v319_v49 = vld [vmem:[#allocation3 + $0x80] sm:$0xff]  ;;  %v464_v50 = vmul.f32 %v2754_v9, %v320_v48  ;;  %v322_v52 = vld [vmem:[#allocation3 + $0x98] sm:$0xff] }
  0x28   :  { %972 = vadd.xlane.f32.xlu1 %v452_v16  ;;  %970 = vadd.xlane.f32.xlu0 %v451_v17  ;;  %v461_v47 = vmul.f32 %v2790_v45, %v317_v44  ;;  %v463_v51 = vmul.f32 %v2749_v4, %v319_v49  ;;  %v321_v53 = vld [vmem:[#allocation3 + $0x90] sm:$0xff]  ;;  %v466_v54 = vmul.f32 %v2751_v6, %v322_v52  ;;  %v324_v56 = vld [vmem:[#allocation3 + $0xa8] sm:$0xff]  ;;  %v323_v57 = vld [vmem:[#allocation3 + $0xa0] sm:$0xff] }
  0x29   :  { %v465_v55 = vmul.f32 %v2746_v1, %v321_v53  ;;  %v468_v58 = vmul.f32 %v2758_v13, %v324_v56  ;;  %v467_v59 = vmul.f32 %v2760_v15, %v323_v57  ;;  %v326_v60 = vld [vmem:[#allocation3 + $0xb8] sm:$0xff]  ;;  %v325_v61 = vld [vmem:[#allocation3 + $0xb0] sm:$0xff]  ;;  %v328_v0 = vld [vmem:[#allocation3 + $0xc8] sm:$0xff] }
  0x2a   :  { %v470_v62 = vmul.f32 %v2764_v19, %v326_v60  ;;  %v469_v63 = vmul.f32 %v2766_v21, %v325_v61  ;;  %v327_v2 = vld [vmem:[#allocation3 + $0xc0] sm:$0xff]  ;;  %v472_v3 = vmul.f32 %v2770_v25, %v328_v0  ;;  %v330_v7 = vld [vmem:[#allocation3 + $0xd8] sm:$0xff]  ;;  %v329_v8 = vld [vmem:[#allocation3 + $0xd0] sm:$0xff] }
  0x2b   :  { %v471_v5 = vmul.f32 %v2772_v27, %v327_v2  ;;  %v474_v10 = vmul.f32 %v2776_v31, %v330_v7  ;;  %v473_v11 = vmul.f32 %v2778_v33, %v329_v8  ;;  %v332_v12 = vld [vmem:[#allocation3 + $0xe8] sm:$0xff]  ;;  %v331_v14 = vld [vmem:[#allocation3 + $0xe0] sm:$0xff]  ;;  %v334_v18 = vld [vmem:[#allocation3 + $0xf8] sm:$0xff] }
  0x2c   :  { %976 = vadd.xlane.f32.xlu1 %v454_v22  ;;  %974 = vadd.xlane.f32.xlu0 %v453_v23  ;;  %v476_v16 = vmul.f32 %v2782_v37, %v332_v12  ;;  %v475_v17 = vmul.f32 %v2784_v39, %v331_v14  ;;  %v333_v20 = vld [vmem:[#allocation3 + $0xf0] sm:$0xff]  ;;  %v478_v22 = vmul.f32 %v2788_v43, %v334_v18  ;;  %v336_v24 = vld [vmem:[#allocation3 + $0x108] sm:$0xff]  ;;  %v335_v26 = vld [vmem:[#allocation3 + $0x100] sm:$0xff] }
  0x2d   :  { %v477_v23 = vmul.f32 %v2790_v45, %v333_v20  ;;  %v338_v30 = vld [vmem:[#allocation3 + $0x118] sm:$0xff]  ;;  %v337_v32 = vld [vmem:[#allocation3 + $0x110] sm:$0xff]  ;;  %v340_v36 = vld [vmem:[#allocation3 + $0x128] sm:$0xff] }
  0x2e   :  { %v339_v38 = vld [vmem:[#allocation3 + $0x120] sm:$0xff]  ;;  %v342_v42 = vld [vmem:[#allocation3 + $0x138] sm:$0xff]  ;;  %v341_v44 = vld [vmem:[#allocation3 + $0x130] sm:$0xff] }
  0x2f   :  { %v344_v48 = vld [vmem:[#allocation3 + $0x148] sm:$0xff]  ;;  %v343_v49 = vld [vmem:[#allocation3 + $0x140] sm:$0xff]  ;;  %v346_v52 = vld [vmem:[#allocation3 + $0x158] sm:$0xff] }
  0x30   :  { %980 = vadd.xlane.f32.xlu1 %v456_v28  ;;  %978 = vadd.xlane.f32.xlu0 %v455_v29  ;;  %v480_v28 = vmul.f32 %v2754_v9, %v336_v24  ;;  %v479_v29 = vmul.f32 %v2749_v4, %v335_v26  ;;  %v345_v53 = vld [vmem:[#allocation3 + $0x150] sm:$0xff]  ;;  %v348_v56 = vld [vmem:[#allocation3 + $0x168] sm:$0xff]  ;;  %v347_v57 = vld [vmem:[#allocation3 + $0x160] sm:$0xff] }
  0x31   :  { %v350_v60 = vld [vmem:[#allocation3 + $0x178] sm:$0xff]  ;;  %v349_v61 = vld [vmem:[#allocation3 + $0x170] sm:$0xff]  ;;  %v352_v0 = vld [vmem:[#allocation3 + $0x188] sm:$0xff] }
  0x32   :  { %v351_v2 = vld [vmem:[#allocation3 + $0x180] sm:$0xff]  ;;  %v354_v7 = vld [vmem:[#allocation3 + $0x198] sm:$0xff]  ;;  %v353_v8 = vld [vmem:[#allocation3 + $0x190] sm:$0xff] }
  0x33   :  { %v356_v12 = vld [vmem:[#allocation3 + $0x1a8] sm:$0xff]  ;;  %v355_v14 = vld [vmem:[#allocation3 + $0x1a0] sm:$0xff]  ;;  %v358_v18 = vld [vmem:[#allocation3 + $0x1b8] sm:$0xff] }
  0x34   :  { %984 = vadd.xlane.f32.xlu1 %v458_v34  ;;  %982 = vadd.xlane.f32.xlu0 %v457_v35  ;;  %v482_v34 = vmul.f32 %v2751_v6, %v338_v30  ;;  %v481_v35 = vmul.f32 %v2746_v1, %v337_v32  ;;  %v357_v20 = vld [vmem:[#allocation3 + $0x1b0] sm:$0xff]  ;;  %v360_v24 = vld [vmem:[#allocation3 + $0x1c8] sm:$0xff]  ;;  %v359_v26 = vld [vmem:[#allocation3 + $0x1c0] sm:$0xff] }
  0x35   :  { %v362_v30 = vld [vmem:[#allocation3 + $0x1d8] sm:$0xff]  ;;  %v361_v32 = vld [vmem:[#allocation3 + $0x1d0] sm:$0xff] }
  0x38   :  { %988 = vadd.xlane.f32.xlu1 %v460_v40  ;;  %986 = vadd.xlane.f32.xlu0 %v459_v41  ;;  %v484_v40 = vmul.f32 %v2758_v13, %v340_v36  ;;  %v483_v41 = vmul.f32 %v2760_v15, %v339_v38  ;;  %v364_v36 = vld [vmem:[#allocation3 + $0x1e8] sm:$0xff]  ;;  %v363_v38 = vld [vmem:[#allocation3 + $0x1e0] sm:$0xff] }
  0x3c   :  { %992 = vadd.xlane.f32.xlu1 %v462_v46  ;;  %990 = vadd.xlane.f32.xlu0 %v461_v47  ;;  %v486_v46 = vmul.f32 %v2764_v19, %v342_v42  ;;  %v485_v47 = vmul.f32 %v2766_v21, %v341_v44  ;;  %v366_v42 = vld [vmem:[#allocation3 + $0x1f8] sm:$0xff]  ;;  %v365_v44 = vld [vmem:[#allocation3 + $0x1f0] sm:$0xff] }
  0x40   :  { %996 = vadd.xlane.f32.xlu1 %v464_v50  ;;  %994 = vadd.xlane.f32.xlu0 %v463_v51  ;;  %v488_v50 = vmul.f32 %v2770_v25, %v344_v48  ;;  %v487_v51 = vmul.f32 %v2772_v27, %v343_v49  ;;  %v368_v48 = vld [vmem:[#allocation3 + $0x208] sm:$0xff]  ;;  %v367_v49 = vld [vmem:[#allocation3 + $0x200] sm:$0xff] }
  0x44   :  { %1000 = vadd.xlane.f32.xlu1 %v466_v54  ;;  %998 = vadd.xlane.f32.xlu0 %v465_v55  ;;  %v490_v54 = vmul.f32 %v2776_v31, %v346_v52  ;;  %v489_v55 = vmul.f32 %v2778_v33, %v345_v53  ;;  %v370_v52 = vld [vmem:[#allocation3 + $0x218] sm:$0xff]  ;;  %v369_v53 = vld [vmem:[#allocation3 + $0x210] sm:$0xff] }
  0x48   :  { %1004 = vadd.xlane.f32.xlu1 %v468_v58  ;;  %1002 = vadd.xlane.f32.xlu0 %v467_v59  ;;  %v492_v58 = vmul.f32 %v2782_v37, %v348_v56  ;;  %v491_v59 = vmul.f32 %v2784_v39, %v347_v57  ;;  %v372_v56 = vld [vmem:[#allocation3 + $0x228] sm:$0xff]  ;;  %v371_v57 = vld [vmem:[#allocation3 + $0x220] sm:$0xff] }
  0x4c   :  { %1008 = vadd.xlane.f32.xlu1 %v470_v62  ;;  %1006 = vadd.xlane.f32.xlu0 %v469_v63  ;;  %v494_v62 = vmul.f32 %v2788_v43, %v350_v60  ;;  %v493_v63 = vmul.f32 %v2790_v45, %v349_v61  ;;  %v374_v60 = vld [vmem:[#allocation3 + $0x238] sm:$0xff]  ;;  %v373_v61 = vld [vmem:[#allocation3 + $0x230] sm:$0xff] }
  0x50   :  { %1012 = vadd.xlane.f32.xlu1 %v472_v3  ;;  %1010 = vadd.xlane.f32.xlu0 %v471_v5  ;;  %v496_v3 = vmul.f32 %v2754_v9, %v352_v0  ;;  %v495_v5 = vmul.f32 %v2749_v4, %v351_v2  ;;  %v517_v0 = vmul.f32 %v2766_v21, %v373_v61  ;;  %v376_v2 = vld [vmem:[#allocation3 + $0x248] sm:$0xff]  ;;  %v389_v61 = vld [vmem:[#allocation3 + $0x2b0] sm:$0xff] }
  0x54   :  { %1016 = vadd.xlane.f32.xlu1 %v474_v10  ;;  %1014 = vadd.xlane.f32.xlu0 %v473_v11  ;;  %v498_v10 = vmul.f32 %v2751_v6, %v354_v7  ;;  %v497_v11 = vmul.f32 %v2746_v1, %v353_v8  ;;  %v520_v7 = vmul.f32 %v2770_v25, %v376_v2 }
  0x55   :  { %v533_v2 = vmul.f32 %v2766_v21, %v389_v61 }
  0x58   :  { %1020 = vadd.xlane.f32.xlu1 %v476_v16  ;;  %1018 = vadd.xlane.f32.xlu0 %v475_v17  ;;  %v500_v16 = vmul.f32 %v2758_v13, %v356_v12  ;;  %v499_v17 = vmul.f32 %v2760_v15, %v355_v14  ;;  %v377_v14 = vld [vmem:[#allocation3 + $0x250] sm:$0xff] }
  0x5c   :  { %1024 = vadd.xlane.f32.xlu1 %v478_v22  ;;  %1022 = vadd.xlane.f32.xlu0 %v477_v23  ;;  %v502_v22 = vmul.f32 %v2764_v19, %v358_v18  ;;  %v501_v23 = vmul.f32 %v2766_v21, %v357_v20  ;;  %v521_v18 = vmul.f32 %v2778_v33, %v377_v14  ;;  %v380_v20 = vld [vmem:[#allocation3 + $0x268] sm:$0xff] }
  0x60   :  { %1028 = vadd.xlane.f32.xlu1 %v480_v28  ;;  %1026 = vadd.xlane.f32.xlu0 %v479_v29  ;;  %v504_v28 = vmul.f32 %v2770_v25, %v360_v24  ;;  %v503_v29 = vmul.f32 %v2772_v27, %v359_v26  ;;  %v524_v24 = vmul.f32 %v2782_v37, %v380_v20 }
  0x64   :  { %1032 = vadd.xlane.f32.xlu1 %v482_v34  ;;  %1030 = vadd.xlane.f32.xlu0 %v481_v35  ;;  %v506_v34 = vmul.f32 %v2776_v31, %v362_v30  ;;  %v505_v35 = vmul.f32 %v2778_v33, %v361_v32  ;;  %v381_v32 = vld [vmem:[#allocation3 + $0x270] sm:$0xff] }
  0x68   :  { %1036 = vadd.xlane.f32.xlu1 %v484_v40  ;;  %1034 = vadd.xlane.f32.xlu0 %v483_v41  ;;  %v508_v40 = vmul.f32 %v2782_v37, %v364_v36  ;;  %v507_v41 = vmul.f32 %v2784_v39, %v363_v38  ;;  %v525_v36 = vmul.f32 %v2790_v45, %v381_v32  ;;  %v384_v38 = vld [vmem:[#allocation3 + $0x288] sm:$0xff] }
  0x69   :  { %v396_v32 = vld [vmem:[#allocation3 + $0x2e8] sm:$0xff] }
  0x6c   :  { %1040 = vadd.xlane.f32.xlu1 %v486_v46  ;;  %1038 = vadd.xlane.f32.xlu0 %v485_v47  ;;  %v510_v46 = vmul.f32 %v2788_v43, %v366_v42  ;;  %v509_v47 = vmul.f32 %v2790_v45, %v365_v44  ;;  %v528_v42 = vmul.f32 %v2754_v9, %v384_v38 }
  0x6d   :  { %v540_v38 = vmul.f32 %v2782_v37, %v396_v32 }
  0x70   :  { %1044 = vadd.xlane.f32.xlu1 %v488_v50  ;;  %1042 = vadd.xlane.f32.xlu0 %v487_v51  ;;  %v512_v50 = vmul.f32 %v2754_v9, %v368_v48  ;;  %v511_v51 = vmul.f32 %v2749_v4, %v367_v49  ;;  %v385_v49 = vld [vmem:[#allocation3 + $0x290] sm:$0xff] }
  0x74   :  { %1048 = vadd.xlane.f32.xlu1 %v490_v54  ;;  %1046 = vadd.xlane.f32.xlu0 %v489_v55  ;;  %v514_v54 = vmul.f32 %v2751_v6, %v370_v52  ;;  %v513_v55 = vmul.f32 %v2746_v1, %v369_v53  ;;  %v529_v52 = vmul.f32 %v2746_v1, %v385_v49  ;;  %v388_v53 = vld [vmem:[#allocation3 + $0x2a8] sm:$0xff]  ;;  %v397_v49 = vld [vmem:[#allocation3 + $0x2f0] sm:$0xff] }
  0x78   :  { %1052 = vadd.xlane.f32.xlu1 %v492_v58  ;;  %1050 = vadd.xlane.f32.xlu0 %v491_v59  ;;  %v516_v58 = vmul.f32 %v2758_v13, %v372_v56  ;;  %v515_v59 = vmul.f32 %v2760_v15, %v371_v57  ;;  %v532_v56 = vmul.f32 %v2758_v13, %v388_v53 }
  0x79   :  { %v541_v53 = vmul.f32 %v2790_v45, %v397_v49  ;;  %v405_v49 = vld [vmem:[#allocation3 + $0x330] sm:$0xff] }
  0x7c   :  { %1056 = vadd.xlane.f32.xlu1 %v494_v62  ;;  %1054 = vadd.xlane.f32.xlu0 %v493_v63  ;;  %v518_v62 = vmul.f32 %v2764_v19, %v374_v60 }
  0x80   :  { %1060 = vadd.xlane.f32.xlu1 %v496_v3  ;;  %1058 = vadd.xlane.f32.xlu0 %v495_v5  ;;  %v375_v5 = vld [vmem:[#allocation3 + $0x240] sm:$0xff] }
  0x84   :  { %1064 = vadd.xlane.f32.xlu1 %v498_v10  ;;  %1062 = vadd.xlane.f32.xlu0 %v497_v11  ;;  %v519_v10 = vmul.f32 %v2772_v27, %v375_v5  ;;  %v378_v11 = vld [vmem:[#allocation3 + $0x258] sm:$0xff]  ;;  %v392_v5 = vld [vmem:[#allocation3 + $0x2c8] sm:$0xff] }
  0x88   :  { %1068 = vadd.xlane.f32.xlu1 %v500_v16  ;;  %1066 = vadd.xlane.f32.xlu0 %v499_v17  ;;  %v522_v16 = vmul.f32 %v2776_v31, %v378_v11  ;;  %v536_v11 = vmul.f32 %v2770_v25, %v392_v5 }
  0x8c   :  { %1072 = vadd.xlane.f32.xlu1 %v502_v22  ;;  %1070 = vadd.xlane.f32.xlu0 %v501_v23  ;;  %v379_v23 = vld [vmem:[#allocation3 + $0x260] sm:$0xff] }
  0x90   :  { %1076 = vadd.xlane.f32.xlu1 %v504_v28  ;;  %1074 = vadd.xlane.f32.xlu0 %v503_v29  ;;  %v523_v28 = vmul.f32 %v2784_v39, %v379_v23  ;;  %v382_v29 = vld [vmem:[#allocation3 + $0x278] sm:$0xff]  ;;  %v393_v23 = vld [vmem:[#allocation3 + $0x2d0] sm:$0xff] }
  0x94   :  { %1080 = vadd.xlane.f32.xlu1 %v506_v34  ;;  %1078 = vadd.xlane.f32.xlu0 %v505_v35  ;;  %v526_v34 = vmul.f32 %v2788_v43, %v382_v29  ;;  %v537_v29 = vmul.f32 %v2778_v33, %v393_v23  ;;  %v404_v23 = vld [vmem:[#allocation3 + $0x328] sm:$0xff] }
  0x95   :  { %v548_v32 = vmul.f32 %v2758_v13, %v404_v23 }
  0x98   :  { %1084 = vadd.xlane.f32.xlu1 %v508_v40  ;;  %1082 = vadd.xlane.f32.xlu0 %v507_v41  ;;  %v383_v41 = vld [vmem:[#allocation3 + $0x280] sm:$0xff] }
  0x9c   :  { %1088 = vadd.xlane.f32.xlu1 %v510_v46  ;;  %1086 = vadd.xlane.f32.xlu0 %v509_v47  ;;  %v527_v46 = vmul.f32 %v2749_v4, %v383_v41  ;;  %v386_v47 = vld [vmem:[#allocation3 + $0x298] sm:$0xff] }
  0xa0   :  { %1092 = vadd.xlane.f32.xlu1 %v512_v50  ;;  %1090 = vadd.xlane.f32.xlu0 %v511_v51  ;;  %v530_v50 = vmul.f32 %v2751_v6, %v386_v47 }
  0xa4   :  { %1096 = vadd.xlane.f32.xlu1 %v514_v54  ;;  %1094 = vadd.xlane.f32.xlu0 %v513_v55  ;;  %v387_v55 = vld [vmem:[#allocation3 + $0x2a0] sm:$0xff] }
  0xa8   :  { %1100 = vadd.xlane.f32.xlu1 %v516_v58  ;;  %1098 = vadd.xlane.f32.xlu0 %v515_v59  ;;  %v531_v58 = vmul.f32 %v2760_v15, %v387_v55  ;;  %v390_v59 = vld [vmem:[#allocation3 + $0x2b8] sm:$0xff]  ;;  %v400_v55 = vld [vmem:[#allocation3 + $0x308] sm:$0xff] }
  0xa9   :  { %v2849_v63 = vpop.xlane.xlu1 %966  ;;  %v2852_v3 = vpop.xlane.xlu0 %962 }
  0xac   :  { %1104 = vadd.xlane.f32.xlu1 %v518_v62  ;;  %1102 = vadd.xlane.f32.xlu0 %v517_v0  ;;  %v534_v62 = vmul.f32 %v2764_v19, %v390_v59  ;;  %v544_v59 = vmul.f32 %v2754_v9, %v400_v55  ;;  %v549_v55 = vmul.f32 %v2766_v21, %v405_v49  ;;  %v412_v49 = vld [vmem:[#allocation3 + $0x368] sm:$0xff] }
  0xad   :  { %v2855_v8 = vpop.xlane.xlu1 %968  ;;  %v2858_v12 = vpop.xlane.xlu0 %964 }
  0xb0   :  { %1108 = vadd.xlane.f32.xlu1 %v520_v7  ;;  %1106 = vadd.xlane.f32.xlu0 %v519_v10  ;;  %v391_v10 = vld [vmem:[#allocation3 + $0x2c0] sm:$0xff] }
  0xb1   :  { %v2861_v17 = vpop.xlane.xlu1 %972  ;;  %v2864_v22 = vpop.xlane.xlu0 %970 }
  0xb4   :  { %1112 = vadd.xlane.f32.xlu1 %v522_v16  ;;  %1110 = vadd.xlane.f32.xlu0 %v521_v18  ;;  %v535_v16 = vmul.f32 %v2772_v27, %v391_v10  ;;  %v394_v18 = vld [vmem:[#allocation3 + $0x2d8] sm:$0xff]  ;;  %v401_v10 = vld [vmem:[#allocation3 + $0x310] sm:$0xff] }
  0xb5   :  { %v2867_v26 = vpop.xlane.xlu1 %976  ;;  %v2870_v30 = vpop.xlane.xlu0 %974 }
  0xb8   :  { %1116 = vadd.xlane.f32.xlu1 %v524_v24  ;;  %1114 = vadd.xlane.f32.xlu0 %v523_v28  ;;  %v538_v24 = vmul.f32 %v2776_v31, %v394_v18  ;;  %v545_v18 = vmul.f32 %v2746_v1, %v401_v10 }
  0xb9   :  { %v2873_v35 = vpop.xlane.xlu1 %980  ;;  %v2876_v40 = vpop.xlane.xlu0 %978 }
  0xbc   :  { %1120 = vadd.xlane.f32.xlu1 %v526_v34  ;;  %1118 = vadd.xlane.f32.xlu0 %v525_v36  ;;  %v395_v36 = vld [vmem:[#allocation3 + $0x2e0] sm:$0xff] }
  0xbd   :  { %v2879_v44 = vpop.xlane.xlu1 %984  ;;  %v2882_v48 = vpop.xlane.xlu0 %982 }
  0xc0   :  { %1124 = vadd.xlane.f32.xlu1 %v528_v42  ;;  %1122 = vadd.xlane.f32.xlu0 %v527_v46  ;;  %v539_v42 = vmul.f32 %v2784_v39, %v395_v36  ;;  %v398_v46 = vld [vmem:[#allocation3 + $0x2f8] sm:$0xff] }
  0xc1   :  { %v2885_v51 = vpop.xlane.xlu1 %988  ;;  %v2888_v54 = vpop.xlane.xlu0 %986 }
  0xc4   :  { %1128 = vadd.xlane.f32.xlu1 %v530_v50  ;;  %1126 = vadd.xlane.f32.xlu0 %v529_v52  ;;  %v542_v50 = vmul.f32 %v2788_v43, %v398_v46 }
  0xc5   :  { %v2891_v57 = vpop.xlane.xlu1 %992  ;;  %v2894_v60 = vpop.xlane.xlu0 %990 }
  0xc8   :  { %1132 = vadd.xlane.f32.xlu1 %v532_v56  ;;  %1130 = vadd.xlane.f32.xlu0 %v531_v58  ;;  %v399_v58 = vld [vmem:[#allocation3 + $0x300] sm:$0xff] }
  0xc9   :  { %v2897_v0 = vpop.xlane.xlu1 %996  ;;  %v2900_v7 = vpop.xlane.xlu0 %994 }
  0xcc   :  { %1136 = vadd.xlane.f32.xlu1 %v534_v62  ;;  %1134 = vadd.xlane.f32.xlu0 %v533_v2  ;;  %v543_v62 = vmul.f32 %v2749_v4, %v399_v58  ;;  %v402_v2 = vld [vmem:[#allocation3 + $0x318] sm:$0xff]  ;;  %v408_v58 = vld [vmem:[#allocation3 + $0x348] sm:$0xff] }
  0xcd   :  { %v2903_v14 = vpop.xlane.xlu1 %1000  ;;  %v2906_v20 = vpop.xlane.xlu0 %998 }
  0xd0   :  { %1140 = vadd.xlane.f32.xlu1 %v536_v11  ;;  %1138 = vadd.xlane.f32.xlu0 %v535_v16  ;;  %v546_v11 = vmul.f32 %v2751_v6, %v402_v2  ;;  %v552_v2 = vmul.f32 %v2770_v25, %v408_v58  ;;  %v556_v58 = vmul.f32 %v2782_v37, %v412_v49 }
  0xd1   :  { %v2909_v28 = vpop.xlane.xlu1 %1004  ;;  %v2912_v34 = vpop.xlane.xlu0 %1002 }
  0xd4   :  { %1144 = vadd.xlane.f32.xlu1 %v538_v24  ;;  %1142 = vadd.xlane.f32.xlu0 %v537_v29  ;;  %v403_v29 = vld [vmem:[#allocation3 + $0x320] sm:$0xff] }
  0xd5   :  { %v2915_v41 = vpop.xlane.xlu1 %1008  ;;  %v2918_v47 = vpop.xlane.xlu0 %1006 }
  0xd8   :  { %1148 = vadd.xlane.f32.xlu1 %v540_v38  ;;  %1146 = vadd.xlane.f32.xlu0 %v539_v42  ;;  %v547_v38 = vmul.f32 %v2760_v15, %v403_v29  ;;  %v406_v42 = vld [vmem:[#allocation3 + $0x338] sm:$0xff]  ;;  %v409_v29 = vld [vmem:[#allocation3 + $0x350] sm:$0xff] }
  0xd9   :  { %v2921_v52 = vpop.xlane.xlu1 %1012  ;;  %v2924_v56 = vpop.xlane.xlu0 %1010 }
  0xdc   :  { %1152 = vadd.xlane.f32.xlu1 %v542_v50  ;;  %1150 = vadd.xlane.f32.xlu0 %v541_v53  ;;  %v550_v50 = vmul.f32 %v2764_v19, %v406_v42  ;;  %v553_v42 = vmul.f32 %v2778_v33, %v409_v29 }
  0xdd   :  { %v2927_v61 = vpop.xlane.xlu1 %1016  ;;  %v2930_v5 = vpop.xlane.xlu0 %1014 }
  0xe0   :  { %1156 = vadd.xlane.f32.xlu1 %v544_v59  ;;  %1154 = vadd.xlane.f32.xlu0 %v543_v62  ;;  %v407_v62 = vld [vmem:[#allocation3 + $0x340] sm:$0xff] }
  0xe1   :  { %v2933_v16 = vpop.xlane.xlu1 %1020  ;;  %v2936_v24 = vpop.xlane.xlu0 %1018 }
  0xe4   :  { %1160 = vadd.xlane.f32.xlu1 %v546_v11  ;;  %1158 = vadd.xlane.f32.xlu0 %v545_v18  ;;  %v551_v11 = vmul.f32 %v2772_v27, %v407_v62  ;;  %v410_v18 = vld [vmem:[#allocation3 + $0x358] sm:$0xff] }
  0xe5   :  { %v2939_v36 = vpop.xlane.xlu1 %1024  ;;  %v2942_v46 = vpop.xlane.xlu0 %1022 }
  0xe8   :  { %1164 = vadd.xlane.f32.xlu1 %v548_v32  ;;  %1162 = vadd.xlane.f32.xlu0 %v547_v38  ;;  %v554_v32 = vmul.f32 %v2776_v31, %v410_v18 }
  0xe9   :  { %v2945_v53 = vpop.xlane.xlu1 %1028  ;;  %v2948_v59 = vpop.xlane.xlu0 %1026 }
  0xec   :  { %1168 = vadd.xlane.f32.xlu1 %v550_v50  ;;  %1166 = vadd.xlane.f32.xlu0 %v549_v55  ;;  %v411_v55 = vld [vmem:[#allocation3 + $0x360] sm:$0xff] }
  0xed   :  { %v2951_v10 = vpop.xlane.xlu1 %1032  ;;  %v2954_v23 = vpop.xlane.xlu0 %1030 }
  0xee   :  { %3842 = vst [vmem:[#allocation12_spill] sm:$0xff] %v2951_v10  ;;  %3843 = vst [vmem:[#allocation13_spill] sm:$0xff] %v2954_v23  ;;  %v555_v10 = vmul.f32 %v2784_v39, %v411_v55 }
  0xf0   :  { %1172 = vadd.xlane.f32.xlu1 %v552_v2  ;;  %1170 = vadd.xlane.f32.xlu0 %v551_v11  ;;  %v414_v2 = vld [vmem:[#allocation3 + $0x378] sm:$0xff]  ;;  %v413_v11 = vld [vmem:[#allocation3 + $0x370] sm:$0xff] }
  0xf1   :  { %v2957_v38 = vpop.xlane.xlu1 %1036  ;;  %v2960_v50 = vpop.xlane.xlu0 %1034  ;;  %v558_v18 = vmul.f32 %v2788_v43, %v414_v2 }
  0xf2   :  { %3844 = vst [vmem:[#allocation14_spill] sm:$0xff] %v2957_v38  ;;  %3845 = vst [vmem:[#allocation15_spill] sm:$0xff] %v2960_v50  ;;  %v557_v38 = vmul.f32 %v2790_v45, %v413_v11 }
  0xf4   :  { %1176 = vadd.xlane.f32.xlu1 %v554_v32  ;;  %1174 = vadd.xlane.f32.xlu0 %v553_v42  ;;  %v416_v32 = vld [vmem:[#allocation3 + $0x388] sm:$0xff]  ;;  %v415_v42 = vld [vmem:[#allocation3 + $0x380] sm:$0xff] }
  0xf5   :  { %v2963_v62 = vpop.xlane.xlu1 %1040  ;;  %v2966_v23 = vpop.xlane.xlu0 %1038  ;;  %v560_v49 = vmul.f32 %v2754_v9, %v416_v32  ;;  %v419_v9 = vld [vmem:[#allocation3 + $0x3a0] sm:$0xff] }
  0xf6   :  { %3846 = vst [vmem:[#allocation16_spill] sm:$0xff] %v2963_v62  ;;  %3847 = vst [vmem:[#allocation17_spill] sm:$0xff] %v2966_v23  ;;  %v559_v62 = vmul.f32 %v2749_v4, %v415_v42  ;;  %v563_v32 = vmul.f32 %v2760_v15, %v419_v9  ;;  %v422_v42 = vld [vmem:[#allocation3 + $0x3b8] sm:$0xff] }
  0xf7   :  { %v426_v9 = vld [vmem:[#allocation3 + $0x3d8] sm:$0xff] }
  0xf8   :  { %1180 = vadd.xlane.f32.xlu1 %v556_v58  ;;  %1178 = vadd.xlane.f32.xlu0 %v555_v10  ;;  %v418_v58 = vld [vmem:[#allocation3 + $0x398] sm:$0xff]  ;;  %v417_v10 = vld [vmem:[#allocation3 + $0x390] sm:$0xff] }
  0xf9   :  { %v2969_v29 = vpop.xlane.xlu1 %1044  ;;  %v2972_v50 = vpop.xlane.xlu0 %1042  ;;  %v562_v2 = vmul.f32 %v2751_v6, %v418_v58  ;;  %v421_v6 = vld [vmem:[#allocation3 + $0x3b0] sm:$0xff] }
  0xfa   :  { %3848 = vst [vmem:[#allocation18_spill] sm:$0xff] %v2969_v29  ;;  %3849 = vst [vmem:[#allocation19_spill] sm:$0xff] %v2972_v50  ;;  %v561_v29 = vmul.f32 %v2746_v1, %v417_v10  ;;  %v565_v58 = vmul.f32 %v2766_v21, %v421_v6  ;;  %v424_v10 = vld [vmem:[#allocation3 + $0x3c8] sm:$0xff] }
  0xfb   :  { %v428_v6 = vld [vmem:[#allocation3 + $0x3e8] sm:$0xff] }
  0xfc   :  { %1184 = vadd.xlane.f32.xlu1 %v558_v18  ;;  %1182 = vadd.xlane.f32.xlu0 %v557_v38  ;;  %v420_v18 = vld [vmem:[#allocation3 + $0x3a8] sm:$0xff] }
  0xfd   :  { %v2975_v55 = vpop.xlane.xlu1 %1048  ;;  %v2978_v23 = vpop.xlane.xlu0 %1046  ;;  %v564_v38 = vmul.f32 %v2758_v13, %v420_v18  ;;  %v423_v13 = vld [vmem:[#allocation3 + $0x3c0] sm:$0xff] }
  0xfe   :  { %v567_v18 = vmul.f32 %v2772_v27, %v423_v13  ;;  %v430_v13 = vld [vmem:[#allocation3 + $0x3f8] sm:$0xff] }
 0x100   :  { %1188 = vadd.xlane.f32.xlu1 %v560_v49  ;;  %1186 = vadd.xlane.f32.xlu0 %v559_v62  ;;  %v566_v62 = vmul.f32 %v2764_v19, %v422_v42  ;;  %v425_v19 = vld [vmem:[#allocation3 + $0x3d0] sm:$0xff] }
 0x101   :  { %v2981_v11 = vpop.xlane.xlu1 %1052  ;;  %v2984_v50 = vpop.xlane.xlu0 %1050  ;;  %v569_v42 = vmul.f32 %v2778_v33, %v425_v19 }
 0x104   :  { %1192 = vadd.xlane.f32.xlu1 %v562_v2  ;;  %1190 = vadd.xlane.f32.xlu0 %v561_v29  ;;  %v568_v29 = vmul.f32 %v2770_v25, %v424_v10  ;;  %v427_v25 = vld [vmem:[#allocation3 + $0x3e0] sm:$0xff] }
 0x105   :  { %v2987_v4 = vpop.xlane.xlu1 %1056  ;;  %v2990_v49 = vpop.xlane.xlu0 %1054  ;;  %v571_v10 = vmul.f32 %v2784_v39, %v427_v25 }
 0x108   :  { %1196 = vadd.xlane.f32.xlu1 %v564_v38  ;;  %1194 = vadd.xlane.f32.xlu0 %v563_v32  ;;  %v570_v32 = vmul.f32 %v2776_v31, %v426_v9  ;;  %v429_v31 = vld [vmem:[#allocation3 + $0x3f0] sm:$0xff] }
 0x109   :  { %v2993_v1 = vpop.xlane.xlu1 %1060  ;;  %v2996_v2 = vpop.xlane.xlu0 %1058  ;;  %v573_v9 = vmul.f32 %v2790_v45, %v429_v31  ;;  %v2639_v45 = vld [vmem:[%s3837_s2] ss:$0 sm:$0xff]  ;;  %s2719_s2 = smov [#allocation8]  }
 0x10a   :  { %s2629_s24 = sshll.u32 %s2719_s2, 4  ;;  %s2630_s24 = int_to_ptr.vmem [resolvable:$true] %s2629_s24 }
 0x10b   :  { %s2688_s25 = scalar_lea.vmem %s2630_s24, 128  ;;  %p2693_p11 = scmp.lt.s32.totalorder %s2630_s24, %s2630_s24 }
 0x10c   :  { %1200 = vadd.xlane.f32.xlu1 %v566_v62  ;;  %1198 = vadd.xlane.f32.xlu0 %v565_v58  ;;  %v572_v58 = vmul.f32 %v2782_v37, %v428_v6  ;;  %p2689_p10 = scmp.ne.s32.totalorder %s2630_s24, %s2688_s25  ;;  %p2694_p12 = scmp.lt.s32.totalorder %s2688_s25, %s2688_s25 }
 0x10d   :  { %v2999_v15 = vpop.xlane.xlu1 %1064  ;;  %v3002_v38 = vpop.xlane.xlu0 %1062 }
 0x10e   :  { %p2695_p13 = por %p2694_p12, %p2693_p11 }
 0x110   :  { %1204 = vadd.xlane.f32.xlu1 %v568_v29  ;;  %1202 = vadd.xlane.f32.xlu0 %v567_v18  ;;  %v574_v18 = vmul.f32 %v2788_v43, %v430_v13  ;;  %p2696_p0 = pnand %p2695_p13, %p2689_p10 }
 0x111   :  { %v3005_v21 = vpop.xlane.xlu1 %1068  ;;  %v3008_v62 = vpop.xlane.xlu0 %1066 }
 0x114   :  { %1208 = vadd.xlane.f32.xlu1 %v570_v32  ;;  %1206 = vadd.xlane.f32.xlu0 %v569_v42 }
 0x115   :  { %v3011_v27 = vpop.xlane.xlu1 %1072  ;;  %v3014_v29 = vpop.xlane.xlu0 %1070 }
 0x118   :  { %1212 = vadd.xlane.f32.xlu1 %v572_v58  ;;  %1210 = vadd.xlane.f32.xlu0 %v571_v10  ;;  %v2718_v10 = vmov 0  }
 0x119   :  { %v3017_v33 = vpop.xlane.xlu1 %1076  ;;  %v3020_v19 = vpop.xlane.xlu0 %1074  ;;  %2647 = vset.pattern.permute.xlu1 %v2718_v10  ;;  %2646 = vset.pattern.permute.xlu0 %v2718_v10 }
 0x11c   :  { %1216 = vadd.xlane.f32.xlu1 %v574_v18  ;;  %1214 = vadd.xlane.f32.xlu0 %v573_v9 }
 0x11d   :  { %v3022_v37 = vpop.xlane.xlu1 %1080  ;;  %v3024_v32 = vpop.xlane.xlu0 %1078 }
 0x121   :  { %v3026_v39 = vpop.xlane.xlu1 %1084  ;;  %v3028_v42 = vpop.xlane.xlu0 %1082 }
 0x122   :  { %3850 = vst [vmem:[#allocation20_spill] sm:$0xff] %v3026_v39 }
 0x125   :  { %v3030_v6 = vpop.xlane.xlu1 %1088  ;;  %v3032_v43 = vpop.xlane.xlu0 %1086 }
 0x126   :  { %3851 = vst [vmem:[#allocation21_spill] sm:$0xff] %v3030_v6  ;;  %3852 = vst [vmem:[#allocation22_spill] sm:$0xff] %v3032_v43 }
 0x129   :  { %v3034_v25 = vpop.xlane.xlu1 %1092  ;;  %v3036_v58 = vpop.xlane.xlu0 %1090 }
 0x12a   :  { %3853 = vst [vmem:[#allocation23_spill] sm:$0xff] %v3034_v25  ;;  %3854 = vst [vmem:[#allocation24_spill] sm:$0xff] %v3036_v58 }
 0x12d   :  { %v3041_v13 = vpop.xlane.xlu1 %1096  ;;  %1229 = vbcast.lane.b32.xlu1 %v2639_v45, 264  ;;  %v3043_v31 = vpop.xlane.xlu0 %1094 }
 0x12e   :  { %3855 = vst [vmem:[#allocation25_spill] sm:$0xff] %v3041_v13  ;;  %3856 = vst [vmem:[#allocation26_spill] sm:$0xff] %v3043_v31 }
 0x131   :  { %v3045_v18 = vpop.xlane.xlu1 %1100  ;;  %1233 = vbcast.lane.b32.xlu1 %v2639_v45, 272  ;;  %v3047_v9 = vpop.xlane.xlu0 %1098 }
 0x132   :  { %3857 = vst [vmem:[#allocation27_spill] sm:$0xff] %v3045_v18  ;;  %3858 = vst [vmem:[#allocation28_spill] sm:$0xff] %v3047_v9  ;;  %1225 = vbcast.lane.b32.xlu0 %v2639_v45, 256 }
 0x135   :  { %v3049_v25 = vpop.xlane.xlu1 %1104  ;;  %1237 = vbcast.lane.b32.xlu1 %v2639_v45, 280  ;;  %v3051_v58 = vpop.xlane.xlu0 %1102 }
 0x136   :  { %3859 = vst [vmem:[#allocation29_spill] sm:$0xff] %v3049_v25  ;;  %3860 = vst [vmem:[#allocation30_spill] sm:$0xff] %v3051_v58  ;;  %1241 = vbcast.lane.b32.xlu0 %v2639_v45, 288 }
 0x139   :  { %v3053_v6 = vpop.xlane.xlu1 %1108  ;;  %1245 = vbcast.lane.b32.xlu1 %v2639_v45, 296  ;;  %v3055_v10 = vpop.xlane.xlu0 %1106 }
 0x13a   :  { %3861 = vst [vmem:[#allocation31_spill] sm:$0xff] %v3053_v6  ;;  %3862 = vst [vmem:[#allocation32_spill] sm:$0xff] %v3055_v10  ;;  %1249 = vbcast.lane.b32.xlu0 %v2639_v45, 304 }
 0x13d   :  { %v3057_v13 = vpop.xlane.xlu1 %1112  ;;  %1253 = vbcast.lane.b32.xlu1 %v2639_v45, 312  ;;  %v3059_v18 = vpop.xlane.xlu0 %1110 }
 0x13e   :  { %3863 = vst [vmem:[#allocation33_spill] sm:$0xff] %v3057_v13  ;;  %3864 = vst [vmem:[#allocation34_spill] sm:$0xff] %v3059_v18  ;;  %1257 = vbcast.lane.b32.xlu0 %v2639_v45, 320 }
 0x141   :  { %v3061_v9 = vpop.xlane.xlu1 %1116  ;;  %1261 = vbcast.lane.b32.xlu1 %v2639_v45, 328  ;;  %v3063_v25 = vpop.xlane.xlu0 %1114 }
 0x142   :  { %3865 = vst [vmem:[#allocation35_spill] sm:$0xff] %v3061_v9  ;;  %3866 = vst [vmem:[#allocation36_spill] sm:$0xff] %v3063_v25  ;;  %1265 = vbcast.lane.b32.xlu0 %v2639_v45, 336 }
 0x145   :  { %v3065_v58 = vpop.xlane.xlu1 %1120  ;;  %1269 = vbcast.lane.b32.xlu1 %v2639_v45, 344  ;;  %v3067_v6 = vpop.xlane.xlu0 %1118 }
 0x146   :  { %3867 = vst [vmem:[#allocation37_spill] sm:$0xff] %v3065_v58  ;;  %3868 = vst [vmem:[#allocation38_spill] sm:$0xff] %v3067_v6  ;;  %1273 = vbcast.lane.b32.xlu0 %v2639_v45, 352 }
 0x149   :  { %v3069_v10 = vpop.xlane.xlu1 %1124  ;;  %1277 = vbcast.lane.b32.xlu1 %v2639_v45, 360  ;;  %v3071_v13 = vpop.xlane.xlu0 %1122 }
 0x14a   :  { %3869 = vst [vmem:[#allocation39_spill] sm:$0xff] %v3069_v10  ;;  %3870 = vst [vmem:[#allocation40_spill] sm:$0xff] %v3071_v13  ;;  %1281 = vbcast.lane.b32.xlu0 %v2639_v45, 368 }
 0x14d   :  { %v3073_v18 = vpop.xlane.xlu1 %1128  ;;  %1285 = vbcast.lane.b32.xlu1 %v2639_v45, 376  ;;  %v3075_v9 = vpop.xlane.xlu0 %1126 }
 0x14e   :  { %3871 = vst [vmem:[#allocation41_spill] sm:$0xff] %v3073_v18  ;;  %3872 = vst [vmem:[#allocation42_spill] sm:$0xff] %v3075_v9 }
 0x151   :  { %v3077_v31 = vpop.xlane.xlu1 %1132  ;;  %v3079_v25 = vpop.xlane.xlu0 %1130 }
 0x152   :  { %3873 = vst [vmem:[#allocation43_spill] sm:$0xff] %v3077_v31  ;;  %3874 = vst [vmem:[#allocation44_spill] sm:$0xff] %v3079_v25 }
 0x155   :  { %v3081_v58 = vpop.xlane.xlu1 %1136  ;;  %v3083_v43 = vpop.xlane.xlu0 %1134 }
 0x156   :  { %3875 = vst [vmem:[#allocation45_spill] sm:$0xff] %v3081_v58  ;;  %3876 = vst [vmem:[#allocation46_spill] sm:$0xff] %v3083_v43 }
 0x159   :  { %v3085_v6 = vpop.xlane.xlu1 %1140  ;;  %v3087_v10 = vpop.xlane.xlu0 %1138 }
 0x15a   :  { %3877 = vst [vmem:[#allocation47_spill] sm:$0xff] %v3085_v6  ;;  %3878 = vst [vmem:[#allocation48_spill] sm:$0xff] %v3087_v10 }
 0x15d   :  { %v3089_v39 = vpop.xlane.xlu1 %1144  ;;  %v3091_v13 = vpop.xlane.xlu0 %1142 }
 0x15e   :  { %3879 = vst [vmem:[#allocation49_spill] sm:$0xff] %v3089_v39  ;;  %3880 = vst [vmem:[#allocation50_spill] sm:$0xff] %v3091_v13 }
 0x161   :  { %v3093_v18 = vpop.xlane.xlu1 %1148  ;;  %v3095_v45 = vpop.xlane.xlu0 %1146 }
 0x162   :  { %3881 = vst [vmem:[#allocation51_spill] sm:$0xff] %v3093_v18  ;;  %3882 = vst [vmem:[#allocation52_spill] sm:$0xff] %v3095_v45 }
 0x165   :  { %v3097_v9 = vpop.xlane.xlu1 %1152  ;;  %v3099_v31 = vpop.xlane.xlu0 %1150 }
 0x166   :  { %3883 = vst [vmem:[#allocation53_spill] sm:$0xff] %v3097_v9  ;;  %3884 = vst [vmem:[#allocation54_spill] sm:$0xff] %v3099_v31 }
 0x169   :  { %v3101_v25 = vpop.xlane.xlu1 %1156  ;;  %v3103_v58 = vpop.xlane.xlu0 %1154 }
 0x16a   :  { %3885 = vst [vmem:[#allocation55_spill] sm:$0xff] %v3101_v25  ;;  %3886 = vst [vmem:[#allocation56_spill] sm:$0xff] %v3103_v58 }
 0x16d   :  { %v3105_v43 = vpop.xlane.xlu1 %1160  ;;  %v3107_v6 = vpop.xlane.xlu0 %1158 }
 0x16e   :  { %3887 = vst [vmem:[#allocation57_spill] sm:$0xff] %v3105_v43  ;;  %3888 = vst [vmem:[#allocation58_spill] sm:$0xff] %v3107_v6 }
 0x171   :  { %v3109_v10 = vpop.xlane.xlu1 %1164  ;;  %v3111_v39 = vpop.xlane.xlu0 %1162 }
 0x172   :  { %3889 = vst [vmem:[#allocation59_spill] sm:$0xff] %v3109_v10  ;;  %3890 = vst [vmem:[#allocation60_spill] sm:$0xff] %v3111_v39 }
 0x175   :  { %v3113_v13 = vpop.xlane.xlu1 %1168  ;;  %v3115_v18 = vpop.xlane.xlu0 %1166 }
 0x176   :  { %3891 = vst [vmem:[#allocation61_spill] sm:$0xff] %v3113_v13  ;;  %3892 = vst [vmem:[#allocation62_spill] sm:$0xff] %v3115_v18 }
 0x179   :  { %v3117_v45 = vpop.xlane.xlu1 %1172  ;;  %v3119_v9 = vpop.xlane.xlu0 %1170 }
 0x17a   :  { %3893 = vst [vmem:[#allocation63_spill] sm:$0xff] %v3117_v45  ;;  %3894 = vst [vmem:[#allocation64_spill] sm:$0xff] %v3119_v9 }
 0x17d   :  { %v3121_v31 = vpop.xlane.xlu1 %1176  ;;  %v3123_v25 = vpop.xlane.xlu0 %1174 }
 0x17e   :  { %3895 = vst [vmem:[#allocation65_spill] sm:$0xff] %v3121_v31  ;;  %3896 = vst [vmem:[#allocation66_spill] sm:$0xff] %v3123_v25 }
 0x181   :  { %v3125_v58 = vpop.xlane.xlu1 %1180  ;;  %v3127_v43 = vpop.xlane.xlu0 %1178 }
 0x182   :  { %3897 = vst [vmem:[#allocation67_spill] sm:$0xff] %v3125_v58  ;;  %3898 = vst [vmem:[#allocation68_spill] sm:$0xff] %v3127_v43 }
 0x185   :  { %v3129_v6 = vpop.xlane.xlu1 %1184  ;;  %v3131_v10 = vpop.xlane.xlu0 %1182 }
 0x186   :  { %3899 = vst [vmem:[#allocation69_spill] sm:$0xff] %v3129_v6  ;;  %3900 = vst [vmem:[#allocation70_spill] sm:$0xff] %v3131_v10 }
 0x189   :  { %v3133_v39 = vpop.xlane.xlu1 %1188  ;;  %v3135_v13 = vpop.xlane.xlu0 %1186 }
 0x18a   :  { %3901 = vst [vmem:[#allocation71_spill] sm:$0xff] %v3133_v39  ;;  %3902 = vst [vmem:[#allocation72_spill] sm:$0xff] %v3135_v13 }
 0x18d   :  { %v3137_v18 = vpop.xlane.xlu1 %1192  ;;  %v3139_v45 = vpop.xlane.xlu0 %1190 }
 0x18e   :  { %3903 = vst [vmem:[#allocation73_spill] sm:$0xff] %v3137_v18  ;;  %3904 = vst [vmem:[#allocation74_spill] sm:$0xff] %v3139_v45 }
 0x191   :  { %v3141_v9 = vpop.xlane.xlu1 %1196  ;;  %v3143_v31 = vpop.xlane.xlu0 %1194 }
 0x192   :  { %3905 = vst [vmem:[#allocation75_spill] sm:$0xff] %v3141_v9  ;;  %3906 = vst [vmem:[#allocation76_spill] sm:$0xff] %v3143_v31 }
 0x195   :  { %v3145_v25 = vpop.xlane.xlu1 %1200  ;;  %v3147_v58 = vpop.xlane.xlu0 %1198 }
 0x196   :  { %3907 = vst [vmem:[#allocation77_spill] sm:$0xff] %v3145_v25  ;;  %3908 = vst [vmem:[#allocation78_spill] sm:$0xff] %v3147_v58  ;;  %v3957_v58 = vld [vmem:[#allocation52_spill] sm:$0xff] }
 0x199   :  { %v3149_v43 = vpop.xlane.xlu1 %1204  ;;  %v3151_v6 = vpop.xlane.xlu0 %1202 }
 0x19a   :  { %3909 = vst [vmem:[#allocation79_spill] sm:$0xff] %v3149_v43  ;;  %3910 = vst [vmem:[#allocation80_spill] sm:$0xff] %v3151_v6 }
 0x19d   :  { %v3153_v10 = vpop.xlane.xlu1 %1208  ;;  %v3155_v39 = vpop.xlane.xlu0 %1206 }
 0x19e   :  { %3911 = vst [vmem:[#allocation81_spill] sm:$0xff] %v3153_v10  ;;  %3912 = vst [vmem:[#allocation82_spill] sm:$0xff] %v3155_v39 }
 0x1a1   :  { %v3157_v13 = vpop.xlane.xlu1 %1212  ;;  %v3159_v18 = vpop.xlane.xlu0 %1210 }
 0x1a2   :  { %3913 = vst [vmem:[#allocation83_spill] sm:$0xff] %v3157_v13  ;;  %3914 = vst [vmem:[#allocation84_spill] sm:$0xff] %v3159_v18 }
 0x1a5   :  { %v3161_v45 = vpop.xlane.xlu1 %1216  ;;  %v3163_v9 = vpop.xlane.xlu0 %1214 }
 0x1a6   :  { %3915 = vst [vmem:[#allocation85_spill] sm:$0xff] %v3161_v45  ;;  %3916 = vst [vmem:[#allocation86_spill] sm:$0xff] %v3163_v9 }
 0x1a9   :  { %v3165_v31 = vpop.permute.xlu1 %1229  ;;  %v3167_v25 = vpop.permute.xlu0 %1225 }
 0x1aa   :  { %v1304_v43 = vadd.f32 %v3165_v31, %v2858_v12  ;;  %v1303_v10 = vadd.f32 %v3167_v25, %v2852_v3 }
 0x1ac   :  { %1563 = vperm.xlu1 %2647, %v1304_v43   ;;  %1560 = vperm.xlu0 %2646, %v1303_v10  }
 0x1ad   :  { %v3173_v39 = vpop.permute.xlu1 %1233  ;;  %v3175_v13 = vpop.permute.xlu0 %1241 }
 0x1ae   :  { %v1305_v45 = vadd.f32 %v3173_v39, %v2849_v63  ;;  %v1307_v3 = vadd.f32 %v3175_v13, %v2864_v22 }
 0x1b0   :  { %1566 = vperm.xlu1 %2647, %v1305_v45  }
 0x1b1   :  { %v3179_v9 = vpop.permute.xlu1 %1237  ;;  %v3181_v18 = vpop.permute.xlu0 %1249 }
 0x1b2   :  { %v1306_v12 = vadd.f32 %v3179_v9, %v2855_v8  ;;  %v1309_v45 = vadd.f32 %v3181_v18, %v2870_v30 }
 0x1b4   :  { %1569 = vperm.xlu0 %2646, %v1306_v12   ;;  %1572 = vperm.xlu1 %2647, %v1307_v3  }
 0x1b5   :  { %v3187_v43 = vpop.permute.xlu1 %1245  ;;  %v3189_v10 = vpop.permute.xlu0 %1257 }
 0x1b6   :  { %v1308_v63 = vadd.f32 %v3187_v43, %v2861_v17  ;;  %v1311_v12 = vadd.f32 %v3189_v10, %v2876_v40 }
 0x1b8   :  { %1575 = vperm.xlu0 %2646, %v1308_v63   ;;  %1578 = vperm.xlu1 %2647, %v1309_v45  }
 0x1b9   :  { %v3195_v6 = vpop.permute.xlu1 %1253  ;;  %v3197_v8 = vpop.permute.xlu0 %1265 }
 0x1ba   :  { %v1310_v22 = vadd.f32 %v3195_v6, %v2867_v26  ;;  %v1313_v63 = vadd.f32 %v3197_v8, %v2882_v48 }
 0x1bc   :  { %1581 = vperm.xlu0 %2646, %v1310_v22   ;;  %1584 = vperm.xlu1 %2647, %v1311_v12  }
 0x1bd   :  { %v3203_v3 = vpop.permute.xlu1 %1261  ;;  %v3205_v17 = vpop.permute.xlu0 %1273 }
 0x1be   :  { %3917 = vst [vmem:[#allocation87_spill] sm:$0xff] %v3205_v17  ;;  %v1312_v30 = vadd.f32 %v3203_v3, %v2873_v35  ;;  %v1315_v40 = vadd.f32 %v3205_v17, %v2888_v54  ;;  %v1319_v54 = vadd.f32 %v3167_v25, %v2900_v7  ;;  %v1325_v7 = vadd.f32 %v3181_v18, %v2918_v47 }
 0x1bf   :  { %v1331_v47 = vadd.f32 %v3205_v17, %v2936_v24  ;;  %v3918_v24 = vld [vmem:[#allocation13_spill] sm:$0xff] }
 0x1c0   :  { %1587 = vperm.xlu0 %2646, %v1312_v30   ;;  %1590 = vperm.xlu1 %2647, %v1313_v63   ;;  %v1320_v63 = vadd.f32 %v3165_v31, %v2897_v0  ;;  %v1326_v0 = vadd.f32 %v3195_v6, %v2915_v41 }
 0x1c1   :  { %v3211_v45 = vpop.permute.xlu1 %1269  ;;  %v3217_v22 = vpop.permute.xlu0 %1281 }
 0x1c2   :  { %v1314_v26 = vadd.f32 %v3211_v45, %v2879_v44  ;;  %v1317_v48 = vadd.f32 %v3217_v22, %v2894_v60  ;;  %v1322_v60 = vadd.f32 %v3179_v9, %v2903_v14  ;;  %v1328_v14 = vadd.f32 %v3203_v3, %v2921_v52 }
 0x1c4   :  { %1593 = vperm.xlu0 %2646, %v1314_v26   ;;  %1596 = vperm.xlu1 %2647, %v1315_v40   ;;  %v1323_v26 = vadd.f32 %v3175_v13, %v2912_v34  ;;  %v1329_v34 = vadd.f32 %v3197_v8, %v2930_v5  ;;  %v1335_v5 = vadd.f32 %v3167_v25, %v2948_v59 }
 0x1c5   :  { %v3219_v12 = vpop.permute.xlu1 %1277  ;;  %v1337_v40 = vadd.f32 %v3173_v39, %v3918_v24 }
 0x1c6   :  { %v1316_v35 = vadd.f32 %v3219_v12, %v2885_v51  ;;  %v1321_v51 = vadd.f32 %v3173_v39, %v2906_v20  ;;  %v1327_v20 = vadd.f32 %v3189_v10, %v2924_v56  ;;  %v1332_v41 = vadd.f32 %v3219_v12, %v2933_v16  ;;  %v3919_v16 = vld [vmem:[#allocation12_spill] sm:$0xff] }
 0x1c7   :  { %v1333_v56 = vadd.f32 %v3217_v22, %v2942_v46  ;;  %v1338_v46 = vadd.f32 %v3179_v9, %v3919_v16 }
 0x1c8   :  { %1599 = vperm.xlu0 %2646, %v1316_v35   ;;  %1602 = vperm.xlu1 %2647, %v1317_v48   ;;  %v3920_v35 = vld [vmem:[#allocation15_spill] sm:$0xff] }
 0x1c9   :  { %v3225_v30 = vpop.permute.xlu1 %1285  ;;  %v1339_v48 = vadd.f32 %v3175_v13, %v3920_v35 }
 0x1ca   :  { %v1318_v44 = vadd.f32 %v3225_v30, %v2891_v57  ;;  %v1324_v57 = vadd.f32 %v3187_v43, %v2909_v28  ;;  %v1330_v28 = vadd.f32 %v3211_v45, %v2927_v61  ;;  %v1334_v52 = vadd.f32 %v3225_v30, %v2939_v36  ;;  %v3921_v36 = vld [vmem:[#allocation14_spill] sm:$0xff] }
 0x1cb   :  { %v1336_v61 = vadd.f32 %v3165_v31, %v2945_v53  ;;  %v1340_v59 = vadd.f32 %v3187_v43, %v3921_v36  ;;  %v3923_v53 = vld [vmem:[#allocation16_spill] sm:$0xff] }
 0x1cc   :  { %1605 = vperm.xlu0 %2646, %v1318_v44   ;;  %1608 = vperm.xlu1 %2647, %v1319_v54   ;;  %v3922_v44 = vld [vmem:[#allocation17_spill] sm:$0xff] }
 0x1cd   :  { %v1341_v54 = vadd.f32 %v3181_v18, %v3922_v44 }
 0x1d0   :  { %1611 = vperm.xlu0 %2646, %v1320_v63   ;;  %1614 = vperm.xlu1 %2647, %v1321_v51   ;;  %v1342_v63 = vadd.f32 %v3195_v6, %v3923_v53  ;;  %v3924_v51 = vld [vmem:[#allocation19_spill] sm:$0xff] }
 0x1d4   :  { %1617 = vperm.xlu0 %2646, %v1322_v60   ;;  %1620 = vperm.xlu1 %2647, %v1323_v26   ;;  %v1343_v60 = vadd.f32 %v3189_v10, %v3924_v51  ;;  %v3925_v26 = vld [vmem:[#allocation18_spill] sm:$0xff] }
 0x1d8   :  { %1623 = vperm.xlu0 %2646, %v1324_v57   ;;  %1626 = vperm.xlu1 %2647, %v1325_v7   ;;  %v1344_v57 = vadd.f32 %v3203_v3, %v3925_v26  ;;  %v1345_v7 = vadd.f32 %v3197_v8, %v2978_v23  ;;  %v1350_v23 = vadd.f32 %v3225_v30, %v2987_v4 }
 0x1d9   :  { %v1356_v4 = vadd.f32 %v3187_v43, %v3005_v21  ;;  %v1362_v21 = vadd.f32 %v3211_v45, %v3022_v37 }
 0x1dc   :  { %1629 = vperm.xlu0 %2646, %v1326_v0   ;;  %1632 = vperm.xlu1 %2647, %v1327_v20   ;;  %v1346_v0 = vadd.f32 %v3211_v45, %v2975_v55  ;;  %v1347_v20 = vadd.f32 %v3205_v17, %v2984_v50  ;;  %v1352_v50 = vadd.f32 %v3165_v31, %v2993_v1 }
 0x1dd   :  { %v1353_v55 = vadd.f32 %v3173_v39, %v3002_v38  ;;  %v1358_v1 = vadd.f32 %v3195_v6, %v3011_v27  ;;  %v1359_v38 = vadd.f32 %v3189_v10, %v3020_v19  ;;  %v3926_v27 = vld [vmem:[#allocation20_spill] sm:$0xff] }
 0x1de   :  { %v1364_v19 = vadd.f32 %v3219_v12, %v3926_v27 }
 0x1e0   :  { %1635 = vperm.xlu0 %2646, %v1328_v14   ;;  %1638 = vperm.xlu1 %2647, %v1329_v34   ;;  %v1348_v14 = vadd.f32 %v3219_v12, %v2981_v11  ;;  %v1349_v34 = vadd.f32 %v3217_v22, %v2990_v49  ;;  %v1354_v11 = vadd.f32 %v3179_v9, %v2999_v15 }
 0x1e1   :  { %v1355_v49 = vadd.f32 %v3175_v13, %v3008_v62  ;;  %v1360_v15 = vadd.f32 %v3203_v3, %v3017_v33  ;;  %v1361_v62 = vadd.f32 %v3197_v8, %v3024_v32  ;;  %v3928_v32 = vld [vmem:[#allocation21_spill] sm:$0xff] }
 0x1e4   :  { %1641 = vperm.xlu0 %2646, %v1330_v28   ;;  %1644 = vperm.xlu1 %2647, %v1331_v47   ;;  %v1351_v28 = vadd.f32 %v3167_v25, %v2996_v2  ;;  %v1357_v2 = vadd.f32 %v3181_v18, %v3014_v29  ;;  %v1363_v29 = vadd.f32 %v3205_v17, %v3028_v42  ;;  %v3927_v47 = vld [vmem:[#allocation22_spill] sm:$0xff] }
 0x1e8   :  { %1647 = vperm.xlu0 %2646, %v1332_v41   ;;  %1650 = vperm.xlu1 %2647, %v1333_v56   ;;  %v1365_v41 = vadd.f32 %v3217_v22, %v3927_v47  ;;  %v1366_v56 = vadd.f32 %v3225_v30, %v3928_v32  ;;  %v3942_v32 = vld [vmem:[#allocation35_spill] sm:$0xff] }
 0x1ec   :  { %1653 = vperm.xlu0 %2646, %v1334_v52   ;;  %1656 = vperm.xlu1 %2647, %v1335_v5   ;;  %v3929_v52 = vld [vmem:[#allocation24_spill] sm:$0xff] }
 0x1ed   :  { %v1367_v37 = vadd.f32 %v3167_v25, %v3929_v52  ;;  %v3943_v52 = vld [vmem:[#allocation38_spill] sm:$0xff] }
 0x1f0   :  { %1659 = vperm.xlu0 %2646, %v1336_v61   ;;  %1662 = vperm.xlu1 %2647, %v1337_v40   ;;  %v3930_v61 = vld [vmem:[#allocation23_spill] sm:$0xff]  ;;  %v3931_v40 = vld [vmem:[#allocation26_spill] sm:$0xff] }
 0x1f1   :  { %v1368_v24 = vadd.f32 %v3165_v31, %v3930_v61  ;;  %v1369_v16 = vadd.f32 %v3173_v39, %v3931_v40 }
 0x1f4   :  { %1665 = vperm.xlu0 %2646, %v1338_v46   ;;  %1668 = vperm.xlu1 %2647, %v1339_v48   ;;  %v3932_v48 = vld [vmem:[#allocation25_spill] sm:$0xff] }
 0x1f5   :  { %v1370_v36 = vadd.f32 %v3179_v9, %v3932_v48 }
 0x1f8   :  { %1671 = vperm.xlu0 %2646, %v1340_v59   ;;  %1674 = vperm.xlu1 %2647, %v1341_v54   ;;  %v3933_v59 = vld [vmem:[#allocation28_spill] sm:$0xff] }
 0x1f9   :  { %v1371_v44 = vadd.f32 %v3175_v13, %v3933_v59  ;;  %v3944_v59 = vld [vmem:[#allocation37_spill] sm:$0xff] }
 0x1fc   :  { %1677 = vperm.xlu0 %2646, %v1342_v63   ;;  %1680 = vperm.xlu1 %2647, %v1343_v60   ;;  %v3934_v63 = vld [vmem:[#allocation27_spill] sm:$0xff]  ;;  %v3935_v60 = vld [vmem:[#allocation30_spill] sm:$0xff] }
 0x1fd   :  { %v1372_v51 = vadd.f32 %v3187_v43, %v3934_v63  ;;  %v1373_v26 = vadd.f32 %v3181_v18, %v3935_v60  ;;  %v3945_v63 = vld [vmem:[#allocation40_spill] sm:$0xff] }
 0x200   :  { %1683 = vperm.xlu0 %2646, %v1344_v57   ;;  %1686 = vperm.xlu1 %2647, %v1345_v7  }
 0x204   :  { %1689 = vperm.xlu0 %2646, %v1346_v0   ;;  %1692 = vperm.xlu1 %2647, %v1347_v20   ;;  %v3936_v0 = vld [vmem:[#allocation29_spill] sm:$0xff] }
 0x205   :  { %v1374_v20 = vadd.f32 %v3195_v6, %v3936_v0 }
 0x208   :  { %1695 = vperm.xlu0 %2646, %v1348_v14   ;;  %1698 = vperm.xlu1 %2647, %v1349_v34   ;;  %v3937_v14 = vld [vmem:[#allocation32_spill] sm:$0xff] }
 0x209   :  { %v1375_v34 = vadd.f32 %v3189_v10, %v3937_v14 }
 0x20c   :  { %1701 = vperm.xlu0 %2646, %v1350_v23   ;;  %1704 = vperm.xlu1 %2647, %v1351_v28  }
 0x210   :  { %1707 = vperm.xlu0 %2646, %v1352_v50   ;;  %1710 = vperm.xlu1 %2647, %v1353_v55   ;;  %v1943_v50 = vlaneseq  ;;  %v3938_v55 = vld [vmem:[#allocation31_spill] sm:$0xff] }
 0x212   :  { %v3383_v47 = vshrl.u32 %v1943_v50, 7 }
 0x214   :  { %1713 = vperm.xlu0 %2646, %v1354_v11   ;;  %1716 = vperm.xlu1 %2647, %v1355_v49   ;;  %v1376_v11 = vadd.f32 %v3203_v3, %v3938_v55  ;;  %v3939_v49 = vld [vmem:[#allocation34_spill] sm:$0xff]  ;;  %v3946_v55 = vld [vmem:[#allocation39_spill] sm:$0xff] }
 0x218   :  { %1719 = vperm.xlu0 %2646, %v1356_v4   ;;  %1722 = vperm.xlu1 %2647, %v1357_v2   ;;  %v1377_v4 = vadd.f32 %v3197_v8, %v3939_v49 }
 0x21c   :  { %1725 = vperm.xlu0 %2646, %v1358_v1   ;;  %1728 = vperm.xlu1 %2647, %v1359_v38   ;;  %v3373_v38 = vand.u32 127, %v1943_v50 }
 0x21e   :  { %v1956_v61 = vadd.s32 4294967280, %v3373_v38  ;;  %v3398_v48 = vsub.s32 %v3373_v38, %v3383_v47 }
 0x220   :  { %1731 = vperm.xlu0 %2646, %v1360_v15   ;;  %1734 = vperm.xlu1 %2647, %v1361_v62   ;;  %v3940_v15 = vld [vmem:[#allocation33_spill] sm:$0xff]  ;;  %v3406_v60 = vsub.s32 %v1956_v61, %v3383_v47 }
 0x221   :  { %v1378_v62 = vadd.f32 %v3211_v45, %v3940_v15 }
 0x224   :  { %1737 = vperm.xlu0 %2646, %v1362_v21   ;;  %1740 = vperm.xlu1 %2647, %v1363_v29   ;;  %v3941_v21 = vld [vmem:[#allocation36_spill] sm:$0xff] }
 0x225   :  { %v1379_v29 = vadd.f32 %v3205_v17, %v3941_v21 }
 0x227   :  { %v3323_v33 = vpop.permute.xlu1 %1563  ;;  %v3329_v5 = vpop.permute.xlu0 %1560 }
 0x228   :  { %1743 = vperm.xlu0 %2646, %v1364_v19   ;;  %1746 = vperm.xlu1 %2647, %v1365_v41   ;;  %v1949_v41 = vadd.s32 4294967288, %v3373_v38 }
 0x22b   :  { %v3331_v42 = vpop.permute.xlu1 %1566 }
 0x22c   :  { %1749 = vperm.xlu0 %2646, %v1366_v56   ;;  %1752 = vperm.xlu1 %2647, %v1367_v37   ;;  %v1380_v56 = vadd.f32 %v3219_v12, %v3942_v32  ;;  %v1381_v37 = vadd.f32 %v3217_v22, %v3943_v52 }
 0x22f   :  { %v3337_v46 = vpop.permute.xlu1 %1572  ;;  %v3339_v35 = vpop.permute.xlu0 %1569 }
 0x230   :  { %1755 = vperm.xlu0 %2646, %v1368_v24   ;;  %1758 = vperm.xlu1 %2647, %v1369_v16   ;;  %v3394_v16 = vsub.s32 %v1949_v41, %v3383_v47  ;;  %v1984_v41 = vadd.s32 4294967248, %v3373_v38 }
 0x233   :  { %v3345_v54 = vpop.permute.xlu1 %1578  ;;  %v3347_v53 = vpop.permute.xlu0 %1575 }
 0x234   :  { %1761 = vperm.xlu0 %2646, %v1370_v36   ;;  %1764 = vperm.xlu1 %2647, %v1371_v44   ;;  %v1963_v36 = vadd.s32 4294967272, %v3373_v38  ;;  %v1382_v44 = vadd.f32 %v3225_v30, %v3944_v59 }
 0x236   :  { %v3415_v49 = vsub.s32 %v1963_v36, %v3383_v47 }
 0x237   :  { %v3353_v57 = vpop.permute.xlu1 %1584  ;;  %v3355_v7 = vpop.permute.xlu0 %1581 }
 0x238   :  { %1767 = vperm.xlu0 %2646, %v1372_v51   ;;  %1770 = vperm.xlu1 %2647, %v1373_v26   ;;  %v1383_v51 = vadd.f32 %v3167_v25, %v3945_v63  ;;  %v1970_v26 = vadd.s32 4294967264, %v3373_v38 }
 0x23b   :  { %v3361_v23 = vpop.permute.xlu1 %1590  ;;  %v3363_v28 = vpop.permute.xlu0 %1587 }
 0x23c   :  { %1773 = vperm.xlu0 %2646, %v1374_v20   ;;  %1776 = vperm.xlu1 %2647, %v1375_v34  }
 0x23f   :  { %v3369_v2 = vpop.permute.xlu1 %1596  ;;  %v3371_v1 = vpop.permute.xlu0 %1593 }
 0x240   :  { %1779 = vperm.xlu0 %2646, %v1376_v11   ;;  %1782 = vperm.xlu1 %2647, %v1377_v4   ;;  %v1384_v11 = vadd.f32 %v3165_v31, %v3946_v55  ;;  %v1977_v4 = vadd.s32 4294967256, %v3373_v38  ;;  %v2005_v55 = vadd.s32 4294967224, %v3373_v38 }
 0x242   :  { %v3431_v59 = vsub.s32 %v1977_v4, %v3383_v47 }
 0x243   :  { %v3379_v27 = vpop.permute.xlu1 %1602  ;;  %v3381_v19 = vpop.permute.xlu0 %1599 }
 0x244   :  { %1785 = vperm.xlu0 %2646, %v1378_v62   ;;  %1788 = vperm.xlu1 %2647, %v1379_v29   ;;  %v3947_v62 = vld [vmem:[#allocation42_spill] sm:$0xff]  ;;  %v3422_v29 = vsub.s32 %v1970_v26, %v3383_v47 }
 0x245   :  { %v1385_v21 = vadd.f32 %v3173_v39, %v3947_v62 }
 0x247   :  { %v1609_v24 = vpop.permute.xlu1 %1608  ;;  %v3391_v40 = vpop.permute.xlu0 %1605 }
 0x248   :  { %1791 = vperm.xlu0 %2646, %v1380_v56   ;;  %1794 = vperm.xlu1 %2647, %v1381_v37   ;;  %v2057_v14 = vrot.slane %v1609_v24, %v3398_v48  ;;  %v3948_v24 = vld [vmem:[#allocation44_spill] sm:$0xff] }
 0x249   :  { %v1387_v36 = vadd.f32 %v3175_v13, %v3948_v24 }
 0x24b   :  { %v1615_v0 = vpop.permute.xlu1 %1614  ;;  %v1612_v20 = vpop.permute.xlu0 %1611 }
 0x24c   :  { %v2061_v34 = vrot.slane %v1612_v20, %v3394_v16  ;;  %1797 = vperm.xlu0 %2646, %v1382_v44   ;;  %1800 = vperm.xlu1 %2647, %v1383_v51   ;;  %v2066_v50 = vrot.slane %v1615_v0, %v3406_v60  ;;  %v1991_v44 = vadd.s32 4294967240, %v3373_v38  ;;  %v3949_v51 = vld [vmem:[#allocation41_spill] sm:$0xff]  ;;  %v3438_v0 = vsub.s32 %v1984_v41, %v3383_v47 }
 0x24d   :  { %v1386_v26 = vadd.f32 %v3179_v9, %v3949_v51  ;;  %v1998_v20 = vadd.s32 4294967232, %v3373_v38 }
 0x24e   :  { %v2062_v15 = vsel %vm1954_vm0, %v2061_v34, %v2057_v14 }
 0x24f   :  { %v1621_v32 = vpop.permute.xlu1 %1620  ;;  %v1618_v56 = vpop.permute.xlu0 %1617  ;;  %v2067_v61 = vsel %vm1961_vm1, %v2066_v50, %v2062_v15  ;;  %v3446_v15 = vsub.s32 %v1991_v44, %v3383_v47  ;;  %v3459_v44 = vsub.s32 %v2005_v55, %v3383_v47  ;;  %v2026_v55 = vadd.s32 4294967200, %v3373_v38 }
 0x250   :  { %v2071_v52 = vrot.slane %v1618_v56, %v3415_v49  ;;  %1803 = vperm.xlu0 %2646, %v1384_v11   ;;  %1806 = vperm.xlu1 %2647, %v1385_v21   ;;  %v2076_v37 = vrot.slane %v1621_v32, %v3422_v29  ;;  %v3950_v21 = vld [vmem:[#allocation43_spill] sm:$0xff]  ;;  %v3951_v32 = vld [vmem:[#allocation46_spill] sm:$0xff] }
 0x251   :  { %v1388_v41 = vadd.f32 %v3187_v43, %v3950_v21  ;;  %v1389_v56 = vadd.f32 %v3181_v18, %v3951_v32 }
 0x252   :  { %v2072_v63 = vsel %vm1968_vm2, %v2071_v52, %v2067_v61  ;;  %v3454_v52 = vsub.s32 %v1998_v20, %v3383_v47  ;;  %v2012_v61 = vadd.s32 4294967216, %v3373_v38 }
 0x253   :  { %v1627_v14 = vpop.permute.xlu1 %1626  ;;  %v1624_v34 = vpop.permute.xlu0 %1623  ;;  %v2077_v4 = vsel %vm1975_vm3, %v2076_v37, %v2072_v63 }
 0x254   :  { %v2081_v50 = vrot.slane %v1624_v34, %v3431_v59  ;;  %1809 = vperm.xlu0 %2646, %v1386_v26   ;;  %1812 = vperm.xlu1 %2647, %v1387_v36   ;;  %v2086_v11 = vrot.slane %v1627_v14, %v3438_v0  ;;  %v2019_v26 = vadd.s32 4294967208, %v3373_v38  ;;  %v3952_v14 = vld [vmem:[#allocation45_spill] sm:$0xff]  ;;  %v3470_v21 = vsub.s32 %v2012_v61, %v3383_v47 }
 0x255   :  { %v1390_v34 = vadd.f32 %v3195_v6, %v3952_v14  ;;  %v3955_v14 = vld [vmem:[#allocation50_spill] sm:$0xff] }
 0x256   :  { %v2082_v62 = vsel %vm1982_vm4, %v2081_v50, %v2077_v4  ;;  %v3953_v50 = vld [vmem:[#allocation48_spill] sm:$0xff] }
 0x257   :  { %v1633_v24 = vpop.permute.xlu1 %1632  ;;  %v1630_v36 = vpop.permute.xlu0 %1629  ;;  %v2087_v51 = vsel %vm1989_vm5, %v2086_v11, %v2082_v62  ;;  %v1391_v4 = vadd.f32 %v3189_v10, %v3953_v50  ;;  %v2033_v62 = vadd.s32 4294967192, %v3373_v38  ;;  %v1393_v50 = vadd.f32 %v3197_v8, %v3955_v14 }
 0x258   :  { %v2091_v37 = vrot.slane %v1630_v36, %v3446_v15  ;;  %1815 = vperm.xlu0 %2646, %v1388_v41   ;;  %1818 = vperm.xlu1 %2647, %v1389_v56   ;;  %v2096_v63 = vrot.slane %v1633_v24, %v3454_v52  ;;  %v3478_v36 = vsub.s32 %v2019_v26, %v3383_v47 }
 0x259   :  { %v3491_v26 = vsub.s32 %v2033_v62, %v3383_v47 }
 0x25a   :  { %v2092_v20 = vsel %vm1996_vm6, %v2091_v37, %v2087_v51  ;;  %v3954_v37 = vld [vmem:[#allocation47_spill] sm:$0xff] }
 0x25b   :  { %v1639_v41 = vpop.permute.xlu1 %1638  ;;  %v1636_v32 = vpop.permute.xlu0 %1635  ;;  %v2097_v24 = vsel %vm2003_vm7, %v2096_v63, %v2092_v20  ;;  %v1392_v51 = vadd.f32 %v3203_v3, %v3954_v37  ;;  %v3956_v37 = vld [vmem:[#allocation49_spill] sm:$0xff] }
 0x25c   :  { %v2101_v11 = vrot.slane %v1636_v32, %v3459_v44  ;;  %1821 = vperm.xlu0 %2646, %v1390_v34   ;;  %1824 = vperm.xlu1 %2647, %v1391_v4   ;;  %v2106_v56 = vrot.slane %v1639_v41, %v3470_v21  ;;  %v3486_v34 = vsub.s32 %v2026_v55, %v3383_v47  ;;  %v2040_v4 = vadd.s32 4294967184, %v3373_v38 }
 0x25d   :  { %v2047_v55 = vadd.s32 4294967176, %v3373_v38  ;;  %v1394_v14 = vadd.f32 %v3211_v45, %v3956_v37 }
 0x25e   :  { %v2102_v61 = vsel %vm2010_vm8, %v2101_v11, %v2097_v24 }
 0x25f   :  { %v1645_v32 = vpop.permute.xlu1 %1644  ;;  %v1642_v41 = vpop.permute.xlu0 %1641  ;;  %v2107_v11 = vsel %vm2017_vm9, %v2106_v56, %v2102_v61  ;;  %v3508_v61 = vsub.s32 %v2047_v55, %v3383_v47 }
 0x260   :  { %v2111_v63 = vrot.slane %v1642_v41, %v3478_v36  ;;  %1827 = vperm.xlu0 %2646, %v1392_v51   ;;  %1830 = vperm.xlu1 %2647, %v1393_v50   ;;  %v2116_v20 = vrot.slane %v1645_v32, %v3486_v34  ;;  %v1395_v41 = vadd.f32 %v3205_v17, %v3957_v58 }
 0x261   :  { %v3502_v51 = vsub.s32 %v2040_v4, %v3383_v47  ;;  %v1948_v47 = vrot.slane %v3329_v5, %v3398_v48 }
 0x262   :  { %v2112_v24 = vsel %vm2024_vm10, %v2111_v63, %v2107_v11  ;;  %v3958_v63 = vld [vmem:[#allocation51_spill] sm:$0xff]  ;;  %v3959_v11 = vld [vmem:[#allocation54_spill] sm:$0xff] }
 0x263   :  { %v1651_v50 = vpop.permute.xlu1 %1650  ;;  %v1648_v62 = vpop.permute.xlu0 %1647  ;;  %v2117_v56 = vsel %vm3841_vm11, %v2116_v20, %v2112_v24  ;;  %v1396_v4 = vadd.f32 %v3219_v12, %v3958_v63  ;;  %v1397_v37 = vadd.f32 %v3217_v22, %v3959_v11  ;;  %v1953_v20 = vrot.slane %v3323_v33, %v3394_v16 }
 0x264   :  { %v2121_v32 = vrot.slane %v1648_v62, %v3491_v26  ;;  %1833 = vperm.xlu0 %2646, %v1394_v14   ;;  %1836 = vperm.xlu1 %2647, %v1395_v41   ;;  %v2126_v38 = vrot.slane %v1651_v50, %v3502_v51  ;;  %v1960_v24 = vrot.slane %v3331_v42, %v3406_v60  ;;  %v3960_v50 = vld [vmem:[#allocation53_spill] sm:$0xff] }
 0x265   :  { %v1967_v33 = vrot.slane %v3339_v35, %v3415_v49  ;;  %v1974_v35 = vrot.slane %v3337_v46, %v3422_v29  ;;  %v3964_v46 = vld [vmem:[#allocation60_spill] sm:$0xff] }
 0x266   :  { %v2122_v58 = vsel %vm2038_vm12, %v2121_v32, %v2117_v56  ;;  %v1398_v32 = vadd.f32 %v3225_v30, %v3960_v50  ;;  %v3961_v56 = vld [vmem:[#allocation56_spill] sm:$0xff]  ;;  %v3963_v50 = vld [vmem:[#allocation58_spill] sm:$0xff] }
 0x267   :  { %v1657_v17 = vpop.permute.xlu1 %1656  ;;  %v1654_v62 = vpop.permute.xlu0 %1653  ;;  %v2127_v55 = vsel %vm2045_vm13, %v2126_v38, %v2122_v58  ;;  %v1399_v63 = vadd.f32 %v3167_v25, %v3961_v56  ;;  %v1955_v58 = vsel %vm1954_vm0, %v1953_v20, %v1948_v47 }
 0x268   :  { %v2131_v14 = vrot.slane %v1654_v62, %v3508_v61  ;;  %1839 = vperm.xlu0 %2646, %v1396_v4   ;;  %1842 = vperm.xlu1 %2647, %v1397_v37   ;;  %v2136_v11 = vrot.slane %v1657_v17, %v3398_v48  ;;  %v3962_v37 = vld [vmem:[#allocation55_spill] sm:$0xff]  ;;  %v1401_v17 = vadd.f32 %v3173_v39, %v3963_v50 }
 0x269   :  { %v1400_v62 = vadd.f32 %v3165_v31, %v3962_v37  ;;  %v1995_v37 = vrot.slane %v3355_v7, %v3446_v15 }
 0x26a   :  { %v3524_v41 = vsel %vm2052_vm14, %v2131_v14, %v2127_v55  ;;  %v1962_v14 = vsel %vm1961_vm1, %v1960_v24, %v1955_v58 }
 0x26b   :  { %v1663_v4 = vpop.permute.xlu1 %1662  ;;  %v1660_v5 = vpop.permute.xlu0 %1659  ;;  %v1969_v56 = vsel %vm1968_vm2, %v1967_v33, %v1962_v14 }
 0x26c   :  { %v2145_v38 = vrot.slane %v1663_v4, %v3406_v60  ;;  %v2140_v42 = vrot.slane %v1660_v5, %v3394_v16  ;;  %1845 = vperm.xlu0 %2646, %v1398_v32   ;;  %1848 = vperm.xlu1 %2647, %v1399_v63   ;;  %v1981_v32 = vrot.slane %v3347_v53, %v3431_v59 }
 0x26d   :  { %v1403_v5 = vadd.f32 %v3175_v13, %v3964_v46  ;;  %v1976_v33 = vsel %vm1975_vm3, %v1974_v35, %v1969_v56  ;;  %v3966_v35 = vld [vmem:[#allocation62_spill] sm:$0xff]  ;;  %v2002_v56 = vrot.slane %v3353_v57, %v3454_v52 }
 0x26e   :  { %v2141_v55 = vsel %vm1954_vm0, %v2140_v42, %v2136_v11  ;;  %v1988_v11 = vrot.slane %v3345_v54, %v3438_v0  ;;  %v3965_v42 = vld [vmem:[#allocation57_spill] sm:$0xff]  ;;  %v1983_v58 = vsel %vm1982_vm4, %v1981_v32, %v1976_v33 }
 0x26f   :  { %v1669_v63 = vpop.permute.xlu1 %1668  ;;  %v2146_v20 = vsel %vm1961_vm1, %v2145_v38, %v2141_v55  ;;  %v1666_v47 = vpop.permute.xlu0 %1665  ;;  %v1402_v38 = vadd.f32 %v3179_v9, %v3965_v42  ;;  %v3968_v42 = vld [vmem:[#allocation64_spill] sm:$0xff] }
 0x270   :  { %v2155_v4 = vrot.slane %v1669_v63, %v3422_v29  ;;  %v2150_v24 = vrot.slane %v1666_v47, %v3415_v49  ;;  %1854 = vperm.xlu1 %2647, %v1401_v17   ;;  %1851 = vperm.xlu0 %2646, %v1400_v62   ;;  %v1405_v17 = vadd.f32 %v3181_v18, %v3966_v35  ;;  %v3967_v63 = vld [vmem:[#allocation59_spill] sm:$0xff] }
 0x271   :  { %v1990_v32 = vsel %vm1989_vm5, %v1988_v11, %v1983_v58  ;;  %v3969_v58 = vld [vmem:[#allocation61_spill] sm:$0xff] }
 0x272   :  { %v2151_v53 = vsel %vm1968_vm2, %v2150_v24, %v2146_v20  ;;  %v1404_v20 = vadd.f32 %v3187_v43, %v3967_v63  ;;  %v1997_v47 = vsel %vm1996_vm6, %v1995_v37, %v1990_v32  ;;  %v2016_v37 = vrot.slane %v3361_v23, %v3470_v21  ;;  %v3970_v32 = vld [vmem:[#allocation66_spill] sm:$0xff] }
 0x273   :  { %v1675_v14 = vpop.permute.xlu1 %1674  ;;  %v2156_v62 = vsel %vm1975_vm3, %v2155_v4, %v2151_v53  ;;  %v1672_v55 = vpop.permute.xlu0 %1671  ;;  %v2009_v4 = vrot.slane %v3363_v28, %v3459_v44  ;;  %v2004_v11 = vsel %vm2003_vm7, %v2002_v56, %v1997_v47  ;;  %v1406_v28 = vadd.f32 %v3195_v6, %v3969_v58 }
 0x274   :  { %v2165_v50 = vrot.slane %v1675_v14, %v3438_v0  ;;  %v2160_v54 = vrot.slane %v1672_v55, %v3431_v59  ;;  %1860 = vperm.xlu1 %2647, %v1403_v5   ;;  %1857 = vperm.xlu0 %2646, %v1402_v38   ;;  %v1407_v38 = vadd.f32 %v3189_v10, %v3968_v42  ;;  %v3973_v42 = vld [vmem:[#allocation65_spill] sm:$0xff] }
 0x275   :  { %v2011_v14 = vsel %vm2010_vm8, %v2009_v4, %v2004_v11  ;;  %v1409_v23 = vadd.f32 %v3197_v8, %v3970_v32 }
 0x276   :  { %v2161_v7 = vsel %vm1982_vm4, %v2160_v54, %v2156_v62  ;;  %v2023_v54 = vrot.slane %v3371_v1, %v3478_v36  ;;  %v2018_v47 = vsel %vm2017_vm9, %v2016_v37, %v2011_v14 }
 0x277   :  { %v1681_v24 = vpop.permute.xlu1 %1680  ;;  %v2166_v46 = vsel %vm1989_vm5, %v2165_v50, %v2161_v7  ;;  %v1678_v5 = vpop.permute.xlu0 %1677  ;;  %v3971_v7 = vld [vmem:[#allocation63_spill] sm:$0xff] }
 0x278   :  { %v2175_v33 = vrot.slane %v1681_v24, %v3454_v52  ;;  %v2170_v57 = vrot.slane %v1678_v5, %v3446_v15  ;;  %1866 = vperm.xlu1 %2647, %v1405_v17   ;;  %1863 = vperm.xlu0 %2646, %v1404_v20   ;;  %v1408_v63 = vadd.f32 %v3203_v3, %v3971_v7 }
 0x279   :  { %v2030_v20 = vrot.slane %v3369_v2, %v3486_v34  ;;  %v3972_v2 = vld [vmem:[#allocation72_spill] sm:$0xff] }
 0x27a   :  { %v2171_v53 = vsel %vm1996_vm6, %v2170_v57, %v2166_v46  ;;  %v2025_v46 = vsel %vm2024_vm10, %v2023_v54, %v2018_v47  ;;  %v2037_v57 = vrot.slane %v3381_v19, %v3491_v26 }
 0x27b   :  { %v1687_v62 = vpop.permute.xlu1 %1686  ;;  %v2176_v55 = vsel %vm2003_vm7, %v2175_v33, %v2171_v53  ;;  %v1684_v50 = vpop.permute.xlu0 %1683  ;;  %v1415_v53 = vadd.f32 %v3167_v25, %v3972_v2  ;;  %v2032_v58 = vsel %vm3841_vm11, %v2030_v20, %v2025_v46 }
 0x27c   :  { %v2185_v35 = vrot.slane %v1687_v62, %v3470_v21  ;;  %v2180_v17 = vrot.slane %v1684_v50, %v3459_v44  ;;  %1872 = vperm.xlu1 %2647, %v1407_v38   ;;  %1869 = vperm.xlu0 %2646, %v1406_v28   ;;  %v1410_v38 = vadd.f32 %v3211_v45, %v3973_v42  ;;  %v3979_v42 = vld [vmem:[#allocation75_spill] sm:$0xff] }
 0x27d   :  { %v2044_v62 = vrot.slane %v3379_v27, %v3502_v51  ;;  %v2039_v25 = vsel %vm2038_vm12, %v2037_v57, %v2032_v58  ;;  %v2051_v50 = vrot.slane %v3391_v40, %v3508_v61 }
 0x27e   :  { %v2181_v56 = vsel %vm2010_vm8, %v2180_v17, %v2176_v55 }
 0x27f   :  { %v1693_v1 = vpop.permute.xlu1 %1692  ;;  %v2186_v4 = vsel %vm2017_vm9, %v2185_v35, %v2181_v56  ;;  %v1690_v24 = vpop.permute.xlu0 %1689  ;;  %v3974_v35 = vld [vmem:[#allocation74_spill] sm:$0xff]  ;;  %v3975_v56 = vld [vmem:[#allocation71_spill] sm:$0xff] }
 0x280   :  { %v2195_v5 = vrot.slane %v1693_v1, %v3486_v34  ;;  %v2190_v33 = vrot.slane %v1690_v24, %v3478_v36  ;;  %1878 = vperm.xlu1 %2647, %v1409_v23   ;;  %1875 = vperm.xlu0 %2646, %v1408_v63   ;;  %v1417_v17 = vadd.f32 %v3173_v39, %v3974_v35  ;;  %v3976_v1 = vld [vmem:[#allocation76_spill] sm:$0xff] }
 0x281   :  { %v1416_v32 = vadd.f32 %v3165_v31, %v3975_v56  ;;  %v2046_v63 = vsel %vm2045_vm13, %v2044_v62, %v2039_v25  ;;  %v1419_v31 = vadd.f32 %v3175_v13, %v3976_v1  ;;  %v3981_v25 = vld [vmem:[#allocation77_spill] sm:$0xff] }
 0x282   :  { %v2191_v11 = vsel %vm2024_vm10, %v2190_v33, %v2186_v4  ;;  %v2053_v40 = vsel %vm2052_vm14, %v2051_v50, %v2046_v63  ;;  %v3977_v4 = vld [vmem:[#allocation73_spill] sm:$0xff] }
 0x283   :  { %v1699_v28 = vpop.permute.xlu1 %1698  ;;  %v2196_v37 = vsel %vm3841_vm11, %v2195_v5, %v2191_v11  ;;  %v1696_v14 = vpop.permute.xlu0 %1695  ;;  %vm2609_vm11 = vcmask 1042434   ;;  %v2608_v47 = vsel %vm2607_vm15, %v3524_v41, %v2053_v40  ;;  %v1418_v24 = vadd.f32 %v3179_v9, %v3977_v4 }
 0x284   :  { %v2205_v55 = vrot.slane %v1699_v28, %v3502_v51  ;;  %v2200_v19 = vrot.slane %v1696_v14, %v3491_v26  ;;  %1896 = vperm.xlu1 %2647, %v1415_v53   ;;  %1881 = vperm.xlu0 %2646, %v1410_v38   ;;  %v3978_v53 = vld [vmem:[#allocation78_spill] sm:$0xff]  ;;  %v1420_v9 = vadd.f32 %v3187_v43, %v3979_v42  ;;  %vm2611_vm15 = vcmask 1043459  }
 0x285   :  { %v1421_v13 = vadd.f32 %v3181_v18, %v3978_v53  ;;  %v1422_v18 = vadd.f32 %v3195_v6, %v3981_v25  ;;  %v3988_v53 = vld [vmem:[#allocation67_spill] sm:$0xff] }
 0x286   :  { %v2201_v54 = vsel %vm2038_vm12, %v2200_v19, %v2196_v37 }
 0x287   :  { %v1705_v27 = vpop.permute.xlu1 %1704  ;;  %v2206_v23 = vsel %vm2045_vm13, %v2205_v55, %v2201_v54  ;;  %v1702_v7 = vpop.permute.xlu0 %1701  ;;  %v3980_v55 = vld [vmem:[#allocation80_spill] sm:$0xff] }
 0x288   :  { %v2210_v20 = vrot.slane %v1702_v7, %v3508_v61  ;;  %1902 = vperm.xlu1 %2647, %v1417_v17   ;;  %1899 = vperm.xlu0 %2646, %v1416_v32   ;;  %v2215_v57 = vrot.slane %v1705_v27, %v3398_v48  ;;  %v1423_v19 = vadd.f32 %v3189_v10, %v3980_v55  ;;  %v3982_v32 = vld [vmem:[#allocation82_spill] sm:$0xff] }
 0x289   :  { %v1425_v27 = vadd.f32 %v3197_v8, %v3982_v32  ;;  %v3986_v8 = vld [vmem:[#allocation87_spill] sm:$0xff] }
 0x28a   :  { %v2211_v39 = vsel %vm2052_vm14, %v2210_v20, %v2206_v23  ;;  %v3983_v23 = vld [vmem:[#allocation79_spill] sm:$0xff] }
 0x28b   :  { %v3635_v46 = vsel %vm2609_vm11, %v2211_v39, %v2608_v47  ;;  %v1711_v5 = vpop.permute.xlu1 %1710  ;;  %v1708_v33 = vpop.permute.xlu0 %1707  ;;  %v1424_v10 = vadd.f32 %v3203_v3, %v3983_v23  ;;  %v3984_v39 = vld [vmem:[#allocation81_spill] sm:$0xff]  ;;  %vm3991_vm11 = vcmask 851712  }
 0x28c   :  { %v2224_v11 = vrot.slane %v1711_v5, %v3406_v60  ;;  %v2219_v2 = vrot.slane %v1708_v33, %v3394_v16  ;;  %1908 = vperm.xlu1 %2647, %v1419_v31   ;;  %1905 = vperm.xlu0 %2646, %v1418_v24   ;;  %v1426_v1 = vadd.f32 %v3211_v45, %v3984_v39  ;;  %v3985_v31 = vld [vmem:[#allocation68_spill] sm:$0xff] }
 0x28d   :  { %v1411_v4 = vadd.f32 %v3986_v8, %v3985_v31  ;;  %v1412_v45 = vadd.f32 %v3219_v12, %v3988_v53 }
 0x28e   :  { %v2220_v41 = vsel %vm1954_vm0, %v2219_v2, %v2215_v57  ;;  %v3987_v2 = vld [vmem:[#allocation84_spill] sm:$0xff] }
 0x28f   :  { %v1717_v38 = vpop.permute.xlu1 %1716  ;;  %v2225_v58 = vsel %vm1961_vm1, %v2224_v11, %v2220_v41  ;;  %v1714_v28 = vpop.permute.xlu0 %1713  ;;  %v1427_v41 = vadd.f32 %v3986_v8, %v3987_v2 }
 0x290   :  { %v2234_v37 = vrot.slane %v1717_v38, %v3422_v29  ;;  %v2229_v14 = vrot.slane %v1714_v28, %v3415_v49  ;;  %1914 = vperm.xlu1 %2647, %v1421_v13   ;;  %1911 = vperm.xlu0 %2646, %v1420_v9  }
 0x292   :  { %v2230_v62 = vsel %vm1968_vm2, %v2229_v14, %v2225_v58 }
 0x293   :  { %v1723_v50 = vpop.permute.xlu1 %1722  ;;  %v2235_v43 = vsel %vm1975_vm3, %v2234_v37, %v2230_v62  ;;  %v1720_v54 = vpop.permute.xlu0 %1719  ;;  %v3989_v37 = vld [vmem:[#allocation83_spill] sm:$0xff]  ;;  %v3990_v62 = vld [vmem:[#allocation70_spill] sm:$0xff] }
 0x294   :  { %v2244_v35 = vrot.slane %v1723_v50, %v3438_v0  ;;  %v2239_v17 = vrot.slane %v1720_v54, %v3431_v59  ;;  %1920 = vperm.xlu1 %2647, %v1423_v19   ;;  %1917 = vperm.xlu0 %2646, %v1422_v18   ;;  %v1428_v14 = vadd.f32 %v3219_v12, %v3989_v37 }
 0x295   :  { %v1413_v55 = vadd.f32 %v3217_v22, %v3990_v62 }
 0x296   :  { %v2240_v56 = vsel %vm1982_vm4, %v2239_v17, %v2235_v43 }
 0x297   :  { %v1729_v7 = vpop.permute.xlu1 %1728  ;;  %v2245_v6 = vsel %vm1989_vm5, %v2244_v35, %v2240_v56  ;;  %v1726_v63 = vpop.permute.xlu0 %1725  ;;  %v3992_v35 = vld [vmem:[#allocation86_spill] sm:$0xff]  ;;  %v3993_v56 = vld [vmem:[#allocation69_spill] sm:$0xff] }
 0x298   :  { %v2254_v20 = vrot.slane %v1729_v7, %v3454_v52  ;;  %v2249_v40 = vrot.slane %v1726_v63, %v3446_v15  ;;  %1926 = vperm.xlu1 %2647, %v1425_v27   ;;  %1923 = vperm.xlu0 %2646, %v1424_v10   ;;  %v1429_v17 = vadd.f32 %v3217_v22, %v3992_v35 }
 0x299   :  { %v1414_v12 = vadd.f32 %v3225_v30, %v3993_v56 }
 0x29a   :  { %v2250_v47 = vsel %vm1996_vm6, %v2249_v40, %v2245_v6  ;;  %v3994_v6 = vld [vmem:[#allocation85_spill] sm:$0xff] }
 0x29b   :  { %v1735_v24 = vpop.permute.xlu1 %1734  ;;  %v2255_v3 = vsel %vm2003_vm7, %v2254_v20, %v2250_v47  ;;  %v1732_v5 = vpop.permute.xlu0 %1731  ;;  %v1430_v63 = vadd.f32 %v3225_v30, %v3994_v6 }
 0x29c   :  { %v2264_v33 = vrot.slane %v1735_v24, %v3470_v21  ;;  %v2259_v57 = vrot.slane %v1732_v5, %v3459_v44  ;;  %1929 = vperm.xlu1 %2647, %v1426_v1   ;;  %1884 = vperm.xlu0 %2646, %v1411_v4  }
 0x29e   :  { %v2260_v11 = vsel %vm2010_vm8, %v2259_v57, %v2255_v3 }
 0x29f   :  { %v1741_v13 = vpop.permute.xlu1 %1740  ;;  %v2265_v42 = vsel %vm2017_vm9, %v2264_v33, %v2260_v11  ;;  %v1738_v9 = vpop.permute.xlu0 %1737 }
 0x2a0   :  { %v2274_v38 = vrot.slane %v1741_v13, %v3486_v34  ;;  %v2269_v58 = vrot.slane %v1738_v9, %v3478_v36  ;;  %1932 = vperm.xlu1 %2647, %v1427_v41   ;;  %1887 = vperm.xlu0 %2646, %v1412_v45  }
 0x2a2   :  { %v2270_v28 = vsel %vm2024_vm10, %v2269_v58, %v2265_v42 }
 0x2a3   :  { %v1747_v19 = vpop.permute.xlu1 %1746  ;;  %v2275_v25 = vsel %vm3991_vm11, %v2274_v38, %v2270_v28  ;;  %v1744_v18 = vpop.permute.xlu0 %1743 }
 0x2a4   :  { %v2284_v50 = vrot.slane %v1747_v19, %v3502_v51  ;;  %v2279_v43 = vrot.slane %v1744_v18, %v3491_v26  ;;  %1935 = vperm.xlu1 %2647, %v1428_v14   ;;  %1890 = vperm.xlu0 %2646, %v1413_v55  }
 0x2a6   :  { %v2280_v54 = vsel %vm2038_vm12, %v2279_v43, %v2275_v25 }
 0x2a7   :  { %v1753_v32 = vpop.permute.xlu1 %1752  ;;  %v2285_v27 = vsel %vm2045_vm13, %v2284_v50, %v2280_v54  ;;  %v1750_v23 = vpop.permute.xlu0 %1749 }
 0x2a8   :  { %v2289_v10 = vrot.slane %v1750_v23, %v3508_v61  ;;  %1938 = vperm.xlu1 %2647, %v1429_v17   ;;  %1893 = vperm.xlu0 %2646, %v1414_v12   ;;  %v2294_v47 = vrot.slane %v1753_v32, %v3398_v48 }
 0x2aa   :  { %v2290_v7 = vsel %vm2052_vm14, %v2289_v10, %v2285_v27 }
 0x2ab   :  { %v2612_v20 = vsel %vm2611_vm15, %v2290_v7, %v3635_v46  ;;  %v1759_v22 = vpop.permute.xlu1 %1758  ;;  %v1756_v40 = vpop.permute.xlu0 %1755  ;;  %vm2613_vm15 = vcmask 1044484  }
 0x2ac   :  { %v2303_v39 = vrot.slane %v1759_v22, %v3406_v60  ;;  %v2298_v1 = vrot.slane %v1756_v40, %v3394_v16  ;;  %1941 = vperm.xlu0 %2646, %v1430_v63  }
 0x2ae   :  { %v2299_v31 = vsel %vm1954_vm0, %v2298_v1, %v2294_v47 }
 0x2af   :  { %v1765_v8 = vpop.permute.xlu1 %1764  ;;  %v2304_v4 = vsel %vm1961_vm1, %v2303_v39, %v2299_v31  ;;  %v1762_v24 = vpop.permute.xlu0 %1761 }
 0x2b0   :  { %v2313_v3 = vrot.slane %v1765_v8, %v3422_v29  ;;  %v2308_v30 = vrot.slane %v1762_v24, %v3415_v49 }
 0x2b2   :  { %v2309_v46 = vsel %vm1968_vm2, %v2308_v30, %v2304_v4 }
 0x2b3   :  { %v1771_v5 = vpop.permute.xlu1 %1770  ;;  %v2314_v33 = vsel %vm1975_vm3, %v2313_v3, %v2309_v46  ;;  %v1768_v57 = vpop.permute.xlu0 %1767 }
 0x2b4   :  { %v2323_v11 = vrot.slane %v1771_v5, %v3438_v0  ;;  %v2318_v2 = vrot.slane %v1768_v57, %v3431_v59 }
 0x2b6   :  { %v2319_v41 = vsel %vm1982_vm4, %v2318_v2, %v2314_v33 }
 0x2b7   :  { %v1777_v53 = vpop.permute.xlu1 %1776  ;;  %v2324_v45 = vsel %vm1989_vm5, %v2323_v11, %v2319_v41  ;;  %v1774_v13 = vpop.permute.xlu0 %1773 }
 0x2b8   :  { %v2333_v42 = vrot.slane %v1777_v53, %v3454_v52  ;;  %v2328_v9 = vrot.slane %v1774_v13, %v3446_v15 }
 0x2ba   :  { %v2329_v38 = vsel %vm1996_vm6, %v2328_v9, %v2324_v45 }
 0x2bb   :  { %v1783_v58 = vpop.permute.xlu1 %1782  ;;  %v2334_v28 = vsel %vm2003_vm7, %v2333_v42, %v2329_v38  ;;  %v1780_v37 = vpop.permute.xlu0 %1779 }
 0x2bc   :  { %v2343_v14 = vrot.slane %v1783_v58, %v3470_v21  ;;  %v2338_v62 = vrot.slane %v1780_v37, %v3459_v44 }
 0x2be   :  { %v2339_v55 = vsel %vm2010_vm8, %v2338_v62, %v2334_v28 }
 0x2bf   :  { %v1789_v19 = vpop.permute.xlu1 %1788  ;;  %v2344_v25 = vsel %vm2017_vm9, %v2343_v14, %v2339_v55  ;;  %v1786_v18 = vpop.permute.xlu0 %1785 }
 0x2c0   :  { %v2353_v50 = vrot.slane %v1789_v19, %v3486_v34  ;;  %v2348_v43 = vrot.slane %v1786_v18, %v3478_v36 }
 0x2c2   :  { %v2349_v54 = vsel %vm2024_vm10, %v2348_v43, %v2344_v25 }
 0x2c3   :  { %v1795_v35 = vpop.permute.xlu1 %1794  ;;  %v2354_v17 = vsel %vm3991_vm11, %v2353_v50, %v2349_v54  ;;  %v1792_v56 = vpop.permute.xlu0 %1791 }
 0x2c4   :  { %v2363_v12 = vrot.slane %v1795_v35, %v3502_v51  ;;  %v2358_v32 = vrot.slane %v1792_v56, %v3491_v26 }
 0x2c6   :  { %v2359_v27 = vsel %vm2038_vm12, %v2358_v32, %v2354_v17 }
 0x2c7   :  { %v1801_v23 = vpop.permute.xlu1 %1800  ;;  %v2364_v10 = vsel %vm2045_vm13, %v2363_v12, %v2359_v27  ;;  %v1798_v7 = vpop.permute.xlu0 %1797 }
 0x2c8   :  { %v2368_v6 = vrot.slane %v1798_v7, %v3508_v61  ;;  %v2373_v39 = vrot.slane %v1801_v23, %v3398_v48 }
 0x2ca   :  { %v2369_v63 = vsel %vm2052_vm14, %v2368_v6, %v2364_v10 }
 0x2cb   :  { %v2614_v22 = vsel %vm2613_vm15, %v2369_v63, %v2612_v20  ;;  %v1807_v40 = vpop.permute.xlu1 %1806  ;;  %v1804_v47 = vpop.permute.xlu0 %1803  ;;  %vm2615_vm15 = vcmask 1045509  }
 0x2cc   :  { %v2382_v1 = vrot.slane %v1807_v40, %v3406_v60  ;;  %v2377_v31 = vrot.slane %v1804_v47, %v3394_v16 }
 0x2ce   :  { %v2378_v8 = vsel %vm1954_vm0, %v2377_v31, %v2373_v39 }
 0x2cf   :  { %v1813_v4 = vpop.permute.xlu1 %1812  ;;  %v2383_v24 = vsel %vm1961_vm1, %v2382_v1, %v2378_v8  ;;  %v1810_v3 = vpop.permute.xlu0 %1809 }
 0x2d0   :  { %v2392_v30 = vrot.slane %v1813_v4, %v3422_v29  ;;  %v2387_v46 = vrot.slane %v1810_v3, %v3415_v49 }
 0x2d2   :  { %v2388_v20 = vsel %vm1968_vm2, %v2387_v46, %v2383_v24 }
 0x2d3   :  { %v1819_v5 = vpop.permute.xlu1 %1818  ;;  %v2393_v33 = vsel %vm1975_vm3, %v2392_v30, %v2388_v20  ;;  %v1816_v57 = vpop.permute.xlu0 %1815 }
 0x2d4   :  { %v2402_v11 = vrot.slane %v1819_v5, %v3438_v0  ;;  %v2397_v2 = vrot.slane %v1816_v57, %v3431_v59 }
 0x2d6   :  { %v2398_v41 = vsel %vm1982_vm4, %v2397_v2, %v2393_v33 }
 0x2d7   :  { %v1825_v53 = vpop.permute.xlu1 %1824  ;;  %v2403_v45 = vsel %vm1989_vm5, %v2402_v11, %v2398_v41  ;;  %v1822_v13 = vpop.permute.xlu0 %1821 }
 0x2d8   :  { %v2412_v42 = vrot.slane %v1825_v53, %v3454_v52  ;;  %v2407_v9 = vrot.slane %v1822_v13, %v3446_v15 }
 0x2da   :  { %v2408_v38 = vsel %vm1996_vm6, %v2407_v9, %v2403_v45 }
 0x2db   :  { %v1831_v58 = vpop.permute.xlu1 %1830  ;;  %v2413_v28 = vsel %vm2003_vm7, %v2412_v42, %v2408_v38  ;;  %v1828_v37 = vpop.permute.xlu0 %1827 }
 0x2dc   :  { %v2422_v14 = vrot.slane %v1831_v58, %v3470_v21  ;;  %v2417_v62 = vrot.slane %v1828_v37, %v3459_v44 }
 0x2de   :  { %v2418_v55 = vsel %vm2010_vm8, %v2417_v62, %v2413_v28 }
 0x2df   :  { %v1837_v19 = vpop.permute.xlu1 %1836  ;;  %v2423_v25 = vsel %vm2017_vm9, %v2422_v14, %v2418_v55  ;;  %v1834_v18 = vpop.permute.xlu0 %1833 }
 0x2e0   :  { %v2432_v50 = vrot.slane %v1837_v19, %v3486_v34  ;;  %v2427_v43 = vrot.slane %v1834_v18, %v3478_v36 }
 0x2e2   :  { %v2428_v54 = vsel %vm2024_vm10, %v2427_v43, %v2423_v25 }
 0x2e3   :  { %v1843_v35 = vpop.permute.xlu1 %1842  ;;  %v2433_v17 = vsel %vm3991_vm11, %v2432_v50, %v2428_v54  ;;  %v1840_v56 = vpop.permute.xlu0 %1839 }
 0x2e4   :  { %v2437_v12 = vrot.slane %v1840_v56, %v3491_v26  ;;  %v2442_v32 = vrot.slane %v1843_v35, %v3502_v51 }
 0x2e6   :  { %v2438_v27 = vsel %vm2038_vm12, %v2437_v12, %v2433_v17 }
 0x2e7   :  { %v1849_v23 = vpop.permute.xlu1 %1848  ;;  %v1846_v10 = vpop.permute.xlu0 %1845  ;;  %v2443_v6 = vsel %vm2045_vm13, %v2442_v32, %v2438_v27 }
 0x2e8   :  { %v2447_v7 = vrot.slane %v1846_v10, %v3508_v61  ;;  %v2452_v45 = vrot.slane %v1849_v23, %v3398_v48 }
 0x2ea   :  { %v2448_v63 = vsel %vm2052_vm14, %v2447_v7, %v2443_v6 }
 0x2eb   :  { %v1855_v40 = vpop.permute.xlu1 %1854  ;;  %v1852_v47 = vpop.permute.xlu0 %1851  ;;  %v3761_v39 = vsel %vm2615_vm15, %v2448_v63, %v2614_v22 }
 0x2ec   :  { %v2456_v41 = vrot.slane %v1852_v47, %v3394_v16  ;;  %v2461_v13 = vrot.slane %v1855_v40, %v3406_v60 }
 0x2ee   :  { %v2457_v9 = vsel %vm1954_vm0, %v2456_v41, %v2452_v45 }
 0x2ef   :  { %v1861_v1 = vpop.permute.xlu1 %1860  ;;  %v1858_v31 = vpop.permute.xlu0 %1857  ;;  %v2462_v55 = vsel %vm1961_vm1, %v2461_v13, %v2457_v9 }
 0x2f0   :  { %v2466_v38 = vrot.slane %v1858_v31, %v3415_v49  ;;  %v2471_v62 = vrot.slane %v1861_v1, %v3422_v29 }
 0x2f3   :  { %v1867_v8 = vpop.permute.xlu1 %1866  ;;  %v1864_v4 = vpop.permute.xlu0 %1863 }
 0x2f4   :  { %v2476_v18 = vrot.slane %v1864_v4, %v3431_v59 }
 0x2f7   :  { %v1873_v24 = vpop.permute.xlu1 %1872  ;;  %v1870_v3 = vpop.permute.xlu0 %1869 }
 0x2f8   :  { %v2486_v12 = vrot.slane %v1870_v3, %v3446_v15  ;;  %v2491_v10 = vrot.slane %v1873_v24, %v3454_v52 }
 0x2fb   :  { %v3763_v30 = vpop.permute.xlu1 %1878  ;;  %v1876_v46 = vpop.permute.xlu0 %1875 }
 0x2fc   :  { %v2496_v40 = vrot.slane %v1876_v46, %v3459_v44 }
 0x2ff   :  { %v1897_v20 = vpop.permute.xlu1 %1896  ;;  %v3765_v5 = vpop.permute.xlu0 %1881 }
 0x300   :  { %v2531_v37 = vrot.slane %v1897_v20, %v3398_v48  ;;  %v2506_v46 = vrot.slane %v3765_v5, %v3478_v36 }
 0x303   :  { %v1903_v33 = vpop.permute.xlu1 %1902  ;;  %v1900_v57 = vpop.permute.xlu0 %1899 }
 0x304   :  { %v2535_v42 = vrot.slane %v1900_v57, %v3394_v16  ;;  %v2540_v14 = vrot.slane %v1903_v33, %v3406_v60  ;;  %v2467_v16 = vsel %vm1968_vm2, %v2466_v38, %v2462_v55  ;;  %v2481_v60 = vrot.slane %v1867_v8, %v3438_v0 }
 0x305   :  { %v2472_v35 = vsel %vm1975_vm3, %v2471_v62, %v2467_v16  ;;  %v2501_v8 = vrot.slane %v3763_v30, %v3470_v21 }
 0x306   :  { %v2536_v19 = vsel %vm1954_vm0, %v2535_v42, %v2531_v37  ;;  %vm3995_vm0 = vmmov %vm3991_vm11 }
 0x307   :  { %v1909_v11 = vpop.permute.xlu1 %1908  ;;  %v1906_v2 = vpop.permute.xlu0 %1905  ;;  %v2541_v48 = vsel %vm1961_vm1, %v2540_v14, %v2536_v19  ;;  %vm3996_vm1 = vmmov %vm3995_vm0 }
 0x308   :  { %v2545_v25 = vrot.slane %v1906_v2, %v3415_v49  ;;  %v2550_v54 = vrot.slane %v1909_v11, %v3422_v29  ;;  %v2477_v49 = vsel %vm1982_vm4, %v2476_v18, %v2472_v35 }
 0x309   :  { %v2482_v7 = vsel %vm1989_vm5, %v2481_v60, %v2477_v49 }
 0x30a   :  { %v2546_v17 = vsel %vm1968_vm2, %v2545_v25, %v2541_v48  ;;  %vm2617_vm2 = vcmask 1046534  }
 0x30b   :  { %v1915_v22 = vpop.permute.xlu1 %1914  ;;  %v1912_v53 = vpop.permute.xlu0 %1911  ;;  %v2551_v29 = vsel %vm1975_vm3, %v2550_v54, %v2546_v17  ;;  %vm2619_vm3 = vcmask 1047559  }
 0x30c   :  { %v2555_v56 = vrot.slane %v1912_v53, %v3431_v59  ;;  %v2560_v23 = vrot.slane %v1915_v22, %v3438_v0  ;;  %v2487_v59 = vsel %vm1996_vm6, %v2486_v12, %v2482_v7 }
 0x30d   :  { %v2492_v4 = vsel %vm2003_vm7, %v2491_v10, %v2487_v59 }
 0x30e   :  { %v2556_v6 = vsel %vm1982_vm4, %v2555_v56, %v2551_v29 }
 0x30f   :  { %v1921_v58 = vpop.permute.xlu1 %1920  ;;  %v1918_v28 = vpop.permute.xlu0 %1917  ;;  %v2561_v0 = vsel %vm1989_vm5, %v2560_v23, %v2556_v6 }
 0x310   :  { %v2565_v63 = vrot.slane %v1918_v28, %v3446_v15  ;;  %v2570_v31 = vrot.slane %v1921_v58, %v3454_v52  ;;  %v2497_v15 = vsel %vm2010_vm8, %v2496_v40, %v2492_v4 }
 0x311   :  { %v2502_v2 = vsel %vm2017_vm9, %v2501_v8, %v2497_v15 }
 0x312   :  { %v2566_v24 = vsel %vm1996_vm6, %v2565_v63, %v2561_v0  ;;  %v2507_v5 = vsel %vm2024_vm10, %v2506_v46, %v2502_v2 }
 0x313   :  { %v1927_v50 = vpop.permute.xlu1 %1926  ;;  %v1924_v43 = vpop.permute.xlu0 %1923  ;;  %v2571_v11 = vsel %vm2003_vm7, %v2570_v31, %v2566_v24 }
 0x314   :  { %v2575_v3 = vrot.slane %v1924_v43, %v3459_v44  ;;  %v2580_v57 = vrot.slane %v1927_v50, %v3470_v21 }
 0x316   :  { %v2576_v41 = vsel %vm2010_vm8, %v2575_v3, %v2571_v11 }
 0x317   :  { %v1930_v32 = vpop.permute.xlu1 %1929  ;;  %v1885_v27 = vpop.permute.xlu0 %1884  ;;  %v2581_v38 = vsel %vm2017_vm9, %v2580_v57, %v2576_v41 }
 0x318   :  { %v2511_v52 = vrot.slane %v1885_v27, %v3486_v34  ;;  %v2585_v44 = vrot.slane %v1930_v32, %v3478_v36 }
 0x31a   :  { %v2512_v21 = vsel %vm3995_vm0, %v2511_v52, %v2507_v5  ;;  %v2586_v28 = vsel %vm2024_vm10, %v2585_v44, %v2581_v38 }
 0x31b   :  { %v1933_v47 = vpop.permute.xlu1 %1932  ;;  %v1888_v1 = vpop.permute.xlu0 %1887 }
 0x31c   :  { %v2516_v30 = vrot.slane %v1888_v1, %v3491_v26  ;;  %v2590_v53 = vrot.slane %v1933_v47, %v3486_v34 }
 0x31e   :  { %v2517_v58 = vsel %vm2038_vm12, %v2516_v30, %v2512_v21  ;;  %v2591_v34 = vsel %vm3996_vm1, %v2590_v53, %v2586_v28 }
 0x31f   :  { %v1936_v20 = vpop.permute.xlu1 %1935  ;;  %v1891_v33 = vpop.permute.xlu0 %1890 }
 0x320   :  { %v2521_v22 = vrot.slane %v1891_v33, %v3502_v51  ;;  %v2595_v42 = vrot.slane %v1936_v20, %v3491_v26 }
 0x322   :  { %v2522_v37 = vsel %vm2045_vm13, %v2521_v22, %v2517_v58  ;;  %v2596_v26 = vsel %vm2038_vm12, %v2595_v42, %v2591_v34 }
 0x323   :  { %v1939_v45 = vpop.permute.xlu1 %1938  ;;  %v1894_v13 = vpop.permute.xlu0 %1893 }
 0x324   :  { %v2526_v9 = vrot.slane %v1894_v13, %v3508_v61  ;;  %v2600_v36 = vrot.slane %v1939_v45, %v3502_v51 }
 0x326   :  { %v2527_v14 = vsel %vm2052_vm14, %v2526_v9, %v2522_v37  ;;  %v2601_v19 = vsel %vm2045_vm13, %v2600_v36, %v2596_v26 }
 0x327   :  { %v1942_v62 = vpop.permute.xlu0 %1941  ;;  %v2618_v25 = vsel %vm2617_vm2, %v2527_v14, %v3761_v39 }
 0x328   :  { %v2605_v55 = vrot.slane %v1942_v62, %v3508_v61 }
 0x32a   :  { %v2606_v51 = vsel %vm2052_vm14, %v2605_v55, %v2601_v19 }
 0x32b   :  { %v2620_v16 = vsel %vm2619_vm3, %v2606_v51, %v2618_v25 }
 0x32c   :  { %2622 = vst [vmem:[#allocation8] sm:$0xff] %v2620_v16 }
 0x32d   :  { %2699 = shalt.err (!%p2696_p0)
}
 0x32e   :  { %2632 = dma.vmem_to_hbm [thread:$0]  %s2630_s24, 128, %s3838_s3, [#allocation5]  }
 0x32f   :  { %2712 = dma.done.wait [#allocation5], 128  }
 0x330   :  { %2713 = vsyncadd [#allocation5], 4294967168 }
 0x331   :  { %2636 = vsyncpa [#allocation4], 1 }
 0x332   :  { %2637 = vsyncpa [#allocation7], 1 }
 0x333   :  { %2638 = vsyncpa [#allocation5], 1 }

</bundles_post_ra>
